<compile_context>
chip_gen: v5e
topology: v5e:2x2
jax: 0.10.0
libtpu: 0.0.40
codegen_flags: <defaults>
</compile_context>

<pallas_src>
import functools

import jax
import jax.numpy as jnp
from jax.experimental import pallas as pl
from jax.experimental.pallas import tpu as pltpu


def _round_up(x, m):
    return ((x + m - 1) // m) * m


def _row_tile(n_pixels):
    # Prefer large row tiles (HBM roofline), but keep >= 2 grid steps when
    # possible so the grid can shard across both TensorCores on v7x.
    for tm in (512, 256, 128):
        if n_pixels >= 2 * tm:
            return tm
    return 128


def _pad_k(k):
    # Contraction dim: at least a multiple of 16 (bf16 sublane packing); round
    # up to 128 when the extra zero padding is cheap (< ~25%).
    k16 = _round_up(k, 16)
    k128 = _round_up(k, 128)
    return k128 if k128 <= int(1.25 * k16) else k16


# --------------------------------------------------------------------------
# Pallas kernel 1: fused conv (im2col matmul) + ReLU + ConvGRU gate update.
#   x      = relu(Wc @ patches + bc)                    (Hc, TM)
#   g      = W_ur @ [x; h] + b_ur                       (2Hc, TM)  [u | r]
#   u, r   = sigmoid(g[:Hc]), sigmoid(g[Hc:])
#   d      = tanh(W_o @ [x; h*r] + bo)                  (Hc, TM)
#   h_new  = h * (1 - u) + d * u
# Outputs: h_new (f32) and relu(h_new) (bf16, feeds the next conv's im2col).
# --------------------------------------------------------------------------
def _conv_gru_kernel(p_ref, h_ref, wc_ref, bc_ref, wur_ref, bur_ref,
                     wo_ref, bo_ref, hn_ref, xr_ref):
    hc = h_ref.shape[0]
    x = jnp.dot(wc_ref[...], p_ref[...], preferred_element_type=jnp.float32)
    x = jnp.maximum(x + bc_ref[...], 0.0)                        # (Hc, TM) f32
    h = h_ref[...]
    # Stacked [x; h] along sublanes (offset Hc, multiple of 8 -> layout-safe);
    # one (2Hc, 2Hc) matmul covers both update and reset gates.
    xh = jnp.concatenate([x, h], axis=0).astype(jnp.bfloat16)    # (2Hc, TM)
    g = (jnp.dot(wur_ref[...], xh, preferred_element_type=jnp.float32)
         + bur_ref[...])                                         # (2Hc, TM)
    u = jax.nn.sigmoid(g[:hc, :])                                # update gate
    r = jax.nn.sigmoid(g[hc:, :])                                # reset gate
    xhr = jnp.concatenate([x, h * r], axis=0).astype(jnp.bfloat16)
    d = jnp.tanh(jnp.dot(wo_ref[...], xhr, preferred_element_type=jnp.float32)
                 + bo_ref[...])
    h_new = h * (1.0 - u) + d * u
    hn_ref[...] = h_new.astype(hn_ref.dtype)
    xr_ref[...] = jnp.maximum(h_new, 0.0).astype(xr_ref.dtype)


def conv_gru_fused(patches_t, h_t, wc, bc, wur, bur, wo, bo):
    """patches_t: (Kp, N) bf16; h_t: (Hc, N) f32
    -> (new hidden (Hc, N) f32, relu(new hidden) (Hc, N) bf16)."""
    kp, n = patches_t.shape
    hc = h_t.shape[0]
    tm = _row_tile(n)
    np_ = _round_up(n, tm)
    if np_ != n:
        patches_t = jnp.pad(patches_t, ((0, 0), (0, np_ - n)))
        h_t = jnp.pad(h_t, ((0, 0), (0, np_ - n)))
    h_new, x_relu = pl.pallas_call(
        _conv_gru_kernel,
        out_shape=(jax.ShapeDtypeStruct((hc, np_), jnp.float32),
                   jax.ShapeDtypeStruct((hc, np_), jnp.bfloat16)),
        grid_spec=pltpu.PrefetchScalarGridSpec(
            num_scalar_prefetch=0,
            grid=(np_ // tm,),
            in_specs=[
                pl.BlockSpec((kp, tm), lambda i: (0, i)),        # patches
                pl.BlockSpec((hc, tm), lambda i: (0, i)),        # h
                pl.BlockSpec((hc, kp), lambda i: (0, 0)),        # conv weight
                pl.BlockSpec((hc, 1), lambda i: (0, 0)),         # conv bias
                pl.BlockSpec((2 * hc, 2 * hc), lambda i: (0, 0)),  # [Wu|Wr]
                pl.BlockSpec((2 * hc, 1), lambda i: (0, 0)),     # [bu|br]
                pl.BlockSpec((hc, 2 * hc), lambda i: (0, 0)),    # Wo
                pl.BlockSpec((hc, 1), lambda i: (0, 0)),         # bo
            ],
            out_specs=[pl.BlockSpec((hc, tm), lambda i: (0, i)),
                       pl.BlockSpec((hc, tm), lambda i: (0, i))],
        ),
        compiler_params=pltpu.CompilerParams(dimension_semantics=("parallel",)),
    )(patches_t, h_t, wc, bc, wur, bur, wo, bo)
    return h_new[:, :n], x_relu[:, :n]


# --------------------------------------------------------------------------
# Pallas kernel 2: final conv as (O, K) @ (K, N_tile) matmul (+ skip connection).
# N sits on lanes so the O=x_channels=2 output is stored lane-dense.
# --------------------------------------------------------------------------
def _conv_out_kernel(p_ref, w_ref, b_ref, res_ref, o_ref, *, add_residual):
    acc = jnp.dot(w_ref[...], p_ref[...], preferred_element_type=jnp.float32)
    acc = acc + b_ref[...]
    if add_residual:
        acc = acc + res_ref[...]
    o_ref[...] = acc.astype(o_ref.dtype)


def conv_out(patches_t, residual_t, w, b, add_residual):
    """patches_t: (Kp, N) bf16; residual_t: (O, N) f32 -> (O, N) f32."""
    kp, n = patches_t.shape
    o = w.shape[0]
    tm = _row_tile(n)
    np_ = _round_up(n, tm)
    if np_ != n:
        patches_t = jnp.pad(patches_t, ((0, 0), (0, np_ - n)))
        residual_t = jnp.pad(residual_t, ((0, 0), (0, np_ - n)))
    out = pl.pallas_call(
        functools.partial(_conv_out_kernel, add_residual=add_residual),
        out_shape=jax.ShapeDtypeStruct((o, np_), jnp.float32),
        grid_spec=pltpu.PrefetchScalarGridSpec(
            num_scalar_prefetch=0,
            grid=(np_ // tm,),
            in_specs=[
                pl.BlockSpec((kp, tm), lambda i: (0, i)),
                pl.BlockSpec((o, kp), lambda i: (0, 0)),
                pl.BlockSpec((o, 1), lambda i: (0, 0)),
                pl.BlockSpec((o, tm), lambda i: (0, i)),
            ],
            out_specs=pl.BlockSpec((o, tm), lambda i: (0, i)),
        ),
        compiler_params=pltpu.CompilerParams(dimension_semantics=("parallel",)),
    )(patches_t, w, b, residual_t)
    return out[:, :n]


# --------------------------------------------------------------------------
# Glue (plain JAX): replication padding + transposed im2col.
# --------------------------------------------------------------------------
def im2col_t(x_cbhw, kernel, dilation, pad, kp):
    """x: (C, B, H, W) -> bf16 patches (Kp, B*H*W); PyTorch (c, kh, kw)
    contraction order; replication (edge) spatial padding; zero K-padding."""
    C, B, H, W = x_cbhw.shape
    xp = jnp.pad(x_cbhw, ((0, 0), (0, 0), (pad, pad), (pad, pad)), mode="edge")
    cols = []
    for ki in range(kernel):
        for kj in range(kernel):
            cols.append(xp[:, :, ki * dilation:ki * dilation + H,
                           kj * dilation:kj * dilation + W])
    p = jnp.stack(cols, axis=1)                       # (C, k*k, B, H, W)
    p = p.reshape(C * kernel * kernel, B * H * W)
    k = C * kernel * kernel
    if kp > k:
        p = jnp.pad(p, ((0, kp - k), (0, 0)))
    # TODO(synk): the 3x3-conv patch tensor is still materialized in HBM (9x the
    # activation bytes); fusing im2col into the kernel via halo DMA would cut it.
    return p.astype(jnp.bfloat16)


def _conv_cfg(idx):
    k = 5 if idx == 0 else 3
    d = 2 if idx == 1 else 1
    pad = 2 if idx in (0, 1) else 1     # ReplicationPad2d amounts
    return k, d, pad


# --------------------------------------------------------------------------
# ConvGRUCell forward (instance_norm=False, dense_connection=0,
# replication_padding=True, gru_kernel_size=1), transposed (C, N) layout.
# --------------------------------------------------------------------------
def conv_gru_cell(params, cell_input_cbhw, state_t, residual_t, depth, hidden,
                  add_residual):
    _, B, H, W = cell_input_cbhw.shape
    x = cell_input_cbhw
    new_states = []
    for idx in range(depth):
        k, d, pad = _conv_cfg(idx)
        kp = params["wc"][idx].shape[1]
        p = im2col_t(x, k, d, pad, kp)
        h_new, x_relu = conv_gru_fused(p, state_t[idx],
                                       params["wc"][idx], params["bc"][idx],
                                       params["wur"][idx], params["bur"][idx],
                                       params["wo"][idx], params["bo"][idx])
        new_states.append(h_new)
        x = x_relu.reshape(hidden, B, H, W)      # bf16, feeds next conv im2col
    k, d, pad = _conv_cfg(depth)
    kp = params["wc"][depth].shape[1]
    p = im2col_t(x, k, d, pad, kp)
    out_t = conv_out(p, residual_t, params["wc"][depth], params["bc"][depth],
                     add_residual)
    return out_t, jnp.stack(new_states, axis=0)


# --------------------------------------------------------------------------
# grad_likelihood: the PyTorch module receives this as an external nn.Module.
# Standard MRI SENSE log-likelihood gradient (plain JAX glue, FFT-based).
# Image is in (2, B, H, W) channel-leading layout.
# --------------------------------------------------------------------------
def grad_likelihood(image_cbhw, masked_kspace, sensitivity_map, sampling_mask,
                    scaling):
    x = image_cbhw[0] + 1j * image_cbhw[1]                    # (B, H, W) complex
    coil_imgs = sensitivity_map * x[:, None]                  # (B, coil, H, W)
    kspace = jnp.fft.fft2(coil_imgs, norm="ortho")
    residual = sampling_mask * (kspace - masked_kspace)
    backproj = jnp.fft.ifft2(sampling_mask * residual, norm="ortho")
    grad = scaling * jnp.sum(jnp.conj(sensitivity_map) * backproj, axis=1)
    return jnp.stack([grad.real, grad.imag], axis=0).astype(image_cbhw.dtype)


# --------------------------------------------------------------------------
# RIM forward (eval mode: only the last cell output is kept)
# --------------------------------------------------------------------------
def rim_forward(cell_params_list, input_image, masked_kspace, sensitivity_map,
                sampling_mask, previous_state=None, loglikelihood_scaling=1.0,
                *, length=8, depth=1, hidden=32, skip_connections=True):
    B, xc, H, W = input_image.shape
    N = B * H * W
    if previous_state is None:
        state_t = jnp.zeros((depth, hidden, N), input_image.dtype)
    else:  # (B, Hc, H, W, depth) -> (depth, Hc, N)
        state_t = jnp.transpose(previous_state, (4, 1, 0, 2, 3)).reshape(
            depth, hidden, N)
    interm = jnp.transpose(input_image, (1, 0, 2, 3))          # (xc, B, H, W)
    cell_outputs = []
    for cell_idx in range(length):
        params = cell_params_list[cell_idx]                    # no_sharing=True
        grad_ll = grad_likelihood(interm, masked_kspace, sensitivity_map,
                                  sampling_mask, loglikelihood_scaling)
        # TODO(synk): PyTorch issues a Python warning when |grad| > 150; no
        # in-graph equivalent (no semantic effect on the output).
        cell_input = jnp.concatenate([interm, grad_ll], axis=0)   # (xc+2,B,H,W)
        out_t, state_t = conv_gru_cell(params, cell_input, state_t,
                                       interm.reshape(xc, N), depth, hidden,
                                       skip_connections)
        interm = out_t.reshape(xc, B, H, W)   # skip connection already folded in
        if cell_idx == length - 1:            # eval mode
            cell_outputs.append(jnp.transpose(interm, (1, 0, 2, 3)))
    prev_state = jnp.transpose(state_t.reshape(depth, hidden, B, H, W),
                               (2, 1, 3, 4, 0))
    return cell_outputs, prev_state


# --------------------------------------------------------------------------
# Deterministic parameter init (PyTorch-layout shapes from ConvGRUCell.__init__)
# and conversion into the transposed / stacked / K-padded / bf16 kernel layout.
# --------------------------------------------------------------------------
def init_params(key, length, depth, hidden, x_channels):
    params_list = []
    for _ in range(length):
        key, *ks = jax.random.split(key, 4 * depth + 3)
        conv_w, conv_b = [], []
        for idx in range(depth + 1):
            in_ch = x_channels + 2 if idx == 0 else hidden
            out_ch = hidden if idx < depth else x_channels
            k = 5 if idx == 0 else 3
            fan_in = in_ch * k * k
            w = (jax.random.normal(ks[idx], (out_ch, in_ch, k, k), jnp.float32)
                 / jnp.sqrt(fan_in))
            conv_w.append(w)
            conv_b.append(jnp.zeros((out_ch,), jnp.float32))
        w_update, w_reset, w_out = [], [], []
        b_update, b_reset, b_out = [], [], []
        base = depth + 1
        for idx in range(depth):
            for j, (wl, bl, bv) in enumerate([(w_update, b_update, 0.0),
                                              (w_reset, b_reset, -1.0),
                                              (w_out, b_out, 0.0)]):
                m = jax.random.normal(ks[base + 3 * idx + j],
                                      (2 * hidden, hidden), jnp.float32)
                q, _ = jnp.linalg.qr(m)               # orthonormal columns
                wl.append(q.T.astype(jnp.float32))    # (H, 2H) PyTorch layout
                bl.append(jnp.full((hidden,), bv, jnp.float32))
        params_list.append(dict(conv_w=conv_w, conv_b=conv_b,
                                w_update=w_update, w_reset=w_reset, w_out=w_out,
                                b_update=b_update, b_reset=b_reset, b_out=b_out))
    return params_list


def prepare_cell_params(raw, hidden):
    """PyTorch-layout params -> kernel layout: conv weights reshaped to
    (O, C*k*k), K zero-padded, bf16; GRU gate weights kept (out, 2*hidden) and
    update|reset stacked along outputs (one matmul per stacked input)."""
    depth = len(raw["w_update"])
    wc, bc = [], []
    for w, b in zip(raw["conv_w"], raw["conv_b"]):
        o = w.shape[0]
        k = w.shape[1] * w.shape[2] * w.shape[3]
        kp = _pad_k(k)
        wm = w.reshape(o, k)
        if kp > k:
            wm = jnp.pad(wm, ((0, 0), (0, kp - k)))
        wc.append(wm.astype(jnp.bfloat16))
        bc.append(b.reshape(o, 1).astype(jnp.float32))
    wur, bur, wo, bo = [], [], [], []
    for i in range(depth):
        wur.append(jnp.concatenate([raw["w_update"][i], raw["w_reset"][i]],
                                   axis=0).astype(jnp.bfloat16))   # (2Hc, 2Hc)
        bur.append(jnp.concatenate([raw["b_update"][i], raw["b_reset"][i]])
                   .reshape(2 * hidden, 1).astype(jnp.float32))
        wo.append(raw["w_out"][i].astype(jnp.bfloat16))            # (Hc, 2Hc)
        bo.append(raw["b_out"][i].reshape(hidden, 1).astype(jnp.float32))
    return dict(wc=wc, bc=bc, wur=wur, bur=bur, wo=wo, bo=bo)


if __name__ == "__main__":
    B, H, W = 2, 16, 16
    x_channels, hidden, coils = 2, 32, 4
    length, depth = 8, 1

    key = jax.random.PRNGKey(0)
    k1, k2, k3, k4, kp = jax.random.split(key, 5)

    input_image = 0.1 * jax.random.normal(k1, (B, x_channels, H, W), jnp.float32)
    kr = jax.random.normal(k2, (B, coils, H, W, 2), jnp.float32)
    masked_kspace = (kr[..., 0] + 1j * kr[..., 1]).astype(jnp.complex64)
    sr = jax.random.normal(k3, (B, coils, H, W, 2), jnp.float32)
    sens = (sr[..., 0] + 1j * sr[..., 1]).astype(jnp.complex64)
    sens = sens / jnp.sqrt(jnp.sum(jnp.abs(sens) ** 2, axis=1, keepdims=True) + 1e-8)
    mask = (jax.random.uniform(k4, (B, 1, H, W)) > 0.5).astype(jnp.float32)
    masked_kspace = masked_kspace * mask

    raw_params = init_params(kp, length, depth, hidden, x_channels)
    cell_params = [prepare_cell_params(p, hidden) for p in raw_params]

    fwd = jax.jit(rim_forward,
                  static_argnames=("length", "depth", "hidden",
                                   "skip_connections"))
    cell_outputs, prev_state = fwd(
        cell_params, input_image, masked_kspace, sens, mask, None, 0.1,
        length=length, depth=depth, hidden=hidden, skip_connections=True)

    jax.block_until_ready(cell_outputs[-1])
    jax.block_until_ready(prev_state)
    assert cell_outputs[-1].shape == (B, x_channels, H, W)
    assert prev_state.shape == (B, hidden, H, W, depth)
    assert bool(jnp.all(jnp.isfinite(cell_outputs[-1])))
    assert bool(jnp.all(jnp.isfinite(prev_state)))
    print("KERNEL_OK")
</pallas_src>

<mosaic_0001>
module attributes {stable_mosaic.version = 11 : i64} {
  func.func @_conv_gru_kernel(%arg0: i32, %arg1: memref<128x256xbf16, #tpu.memory_space<vmem>>, %arg2: memref<32x256xf32, #tpu.memory_space<vmem>>, %arg3: memref<32x128xbf16, #tpu.memory_space<vmem>>, %arg4: memref<32x1xf32, #tpu.memory_space<vmem>>, %arg5: memref<64x64xbf16, #tpu.memory_space<vmem>>, %arg6: memref<64x1xf32, #tpu.memory_space<vmem>>, %arg7: memref<32x64xbf16, #tpu.memory_space<vmem>>, %arg8: memref<32x1xf32, #tpu.memory_space<vmem>>, %arg9: memref<32x256xf32, #tpu.memory_space<vmem>>, %arg10: memref<32x256xbf16, #tpu.memory_space<vmem>>) attributes {dimension_semantics = [#tpu.dimension_semantics<parallel>], iteration_bounds = array<i64: 2>, scalar_prefetch = 0 : i64, scratch_operands = 0 : i64, tpu.core_type = #tpu.core_type<tc>, window_params = [{transform_indices = @transform_0, window_bounds = array<i64: 128, 256>}, {transform_indices = @transform_1, window_bounds = array<i64: 32, 256>}, {pipeline_mode = #tpu.pipeline_mode<synchronous>, transform_indices = @transform_2, window_bounds = array<i64: 32, 128>}, {pipeline_mode = #tpu.pipeline_mode<synchronous>, transform_indices = @transform_3, window_bounds = array<i64: 32, 1>}, {pipeline_mode = #tpu.pipeline_mode<synchronous>, transform_indices = @transform_4, window_bounds = array<i64: 64, 64>}, {pipeline_mode = #tpu.pipeline_mode<synchronous>, transform_indices = @transform_5, window_bounds = array<i64: 64, 1>}, {pipeline_mode = #tpu.pipeline_mode<synchronous>, transform_indices = @transform_6, window_bounds = array<i64: 32, 64>}, {pipeline_mode = #tpu.pipeline_mode<synchronous>, transform_indices = @transform_7, window_bounds = array<i64: 32, 1>}, {transform_indices = @transform_8, window_bounds = array<i64: 32, 256>}, {transform_indices = @transform_9, window_bounds = array<i64: 32, 256>}]} {
    %c0 = arith.constant 0 : index
    %c0_0 = arith.constant 0 : index
    %0 = vector.load %arg3[%c0, %c0_0] : memref<32x128xbf16, #tpu.memory_space<vmem>>, vector<32x128xbf16>
    %c0_1 = arith.constant 0 : index
    %c0_2 = arith.constant 0 : index
    %1 = vector.load %arg1[%c0_1, %c0_2] : memref<128x256xbf16, #tpu.memory_space<vmem>>, vector<128x256xbf16>
    %cst = arith.constant dense<0.000000e+00> : vector<32x256xf32>
    %2 = tpu.matmul %0, %1, %cst {dimension_numbers = #tpu.dot_dimension_numbers<[1], [0], [0], [1], [0, 0, 1, 1], [], []>} : vector<32x128xbf16>, vector<128x256xbf16>, vector<32x256xf32> -> vector<32x256xf32>
    %c0_3 = arith.constant 0 : index
    %c0_4 = arith.constant 0 : index
    %3 = vector.load %arg4[%c0_3, %c0_4] : memref<32x1xf32, #tpu.memory_space<vmem>>, vector<32x1xf32>
    %4 = vector.broadcast %3 : vector<32x1xf32> to vector<32x256xf32>
    %5 = arith.addf %2, %4 : vector<32x256xf32>
    %cst_5 = arith.constant 0.000000e+00 : f32
    %6 = vector.broadcast %cst_5 : f32 to vector<32x256xf32>
    %7 = arith.maximumf %5, %6 : vector<32x256xf32>
    %c0_6 = arith.constant 0 : index
    %c0_7 = arith.constant 0 : index
    %8 = vector.load %arg2[%c0_6, %c0_7] : memref<32x256xf32, #tpu.memory_space<vmem>>, vector<32x256xf32>
    %9 = tpu.concatenate %7, %8 in 0 : vector<32x256xf32>, vector<32x256xf32> -> vector<64x256xf32>
    %10 = arith.truncf %9 : vector<64x256xf32> to vector<64x256xbf16>
    %c0_8 = arith.constant 0 : index
    %c0_9 = arith.constant 0 : index
    %11 = vector.load %arg5[%c0_8, %c0_9] : memref<64x64xbf16, #tpu.memory_space<vmem>>, vector<64x64xbf16>
    %cst_10 = arith.constant dense<0.000000e+00> : vector<64x256xf32>
    %12 = tpu.matmul %11, %10, %cst_10 {dimension_numbers = #tpu.dot_dimension_numbers<[1], [0], [0], [1], [0, 0, 1, 1], [], []>} : vector<64x64xbf16>, vector<64x256xbf16>, vector<64x256xf32> -> vector<64x256xf32>
    %c0_11 = arith.constant 0 : index
    %c0_12 = arith.constant 0 : index
    %13 = vector.load %arg6[%c0_11, %c0_12] : memref<64x1xf32, #tpu.memory_space<vmem>>, vector<64x1xf32>
    %14 = vector.broadcast %13 : vector<64x1xf32> to vector<64x256xf32>
    %15 = arith.addf %12, %14 : vector<64x256xf32>
    %16 = vector.extract_strided_slice %15 {offsets = [0, 0], sizes = [32, 256], strides = [1, 1]} : vector<64x256xf32> to vector<32x256xf32>
    %17 = arith.negf %16 : vector<32x256xf32>
    %18 = math.exp %17 : vector<32x256xf32>
    %cst_13 = arith.constant 1.000000e+00 : f32
    %19 = vector.broadcast %cst_13 : f32 to vector<32x256xf32>
    %20 = arith.addf %19, %18 : vector<32x256xf32>
    %21 = arith.divf %19, %20 : vector<32x256xf32>
    %22 = vector.extract_strided_slice %15 {offsets = [32, 0], sizes = [32, 256], strides = [1, 1]} : vector<64x256xf32> to vector<32x256xf32>
    %23 = arith.negf %22 : vector<32x256xf32>
    %24 = math.exp %23 : vector<32x256xf32>
    %cst_14 = arith.constant 1.000000e+00 : f32
    %25 = vector.broadcast %cst_14 : f32 to vector<32x256xf32>
    %26 = arith.addf %25, %24 : vector<32x256xf32>
    %27 = arith.divf %25, %26 : vector<32x256xf32>
    %28 = arith.mulf %8, %27 : vector<32x256xf32>
    %29 = tpu.concatenate %7, %28 in 0 : vector<32x256xf32>, vector<32x256xf32> -> vector<64x256xf32>
    %30 = arith.truncf %29 : vector<64x256xf32> to vector<64x256xbf16>
    %c0_15 = arith.constant 0 : index
    %c0_16 = arith.constant 0 : index
    %31 = vector.load %arg7[%c0_15, %c0_16] : memref<32x64xbf16, #tpu.memory_space<vmem>>, vector<32x64xbf16>
    %cst_17 = arith.constant dense<0.000000e+00> : vector<32x256xf32>
    %32 = tpu.matmul %31, %30, %cst_17 {dimension_numbers = #tpu.dot_dimension_numbers<[1], [0], [0], [1], [0, 0, 1, 1], [], []>} : vector<32x64xbf16>, vector<64x256xbf16>, vector<32x256xf32> -> vector<32x256xf32>
    %c0_18 = arith.constant 0 : index
    %c0_19 = arith.constant 0 : index
    %33 = vector.load %arg8[%c0_18, %c0_19] : memref<32x1xf32, #tpu.memory_space<vmem>>, vector<32x1xf32>
    %34 = vector.broadcast %33 : vector<32x1xf32> to vector<32x256xf32>
    %35 = arith.addf %32, %34 : vector<32x256xf32>
    %36 = math.tanh %35 : vector<32x256xf32>
    %cst_20 = arith.constant 1.000000e+00 : f32
    %37 = vector.broadcast %cst_20 : f32 to vector<32x256xf32>
    %38 = arith.subf %37, %21 : vector<32x256xf32>
    %39 = arith.mulf %8, %38 : vector<32x256xf32>
    %40 = arith.mulf %36, %21 : vector<32x256xf32>
    %41 = arith.addf %39, %40 : vector<32x256xf32>
    %c0_21 = arith.constant 0 : index
    %c0_22 = arith.constant 0 : index
    %42 = vector.load %arg9[%c0_21, %c0_22] : memref<32x256xf32, #tpu.memory_space<vmem>>, vector<32x256xf32>
    tpu.vector_store %arg9[%c0_21, %c0_22], %41 {strides = array<i32>} : memref<32x256xf32, #tpu.memory_space<vmem>>, vector<32x256xf32>,
    %cst_23 = arith.constant 0.000000e+00 : f32
    %43 = vector.broadcast %cst_23 : f32 to vector<32x256xf32>
    %44 = arith.maximumf %41, %43 : vector<32x256xf32>
    %45 = arith.truncf %44 : vector<32x256xf32> to vector<32x256xbf16>
    %c0_24 = arith.constant 0 : index
    %c0_25 = arith.constant 0 : index
    %46 = vector.load %arg10[%c0_24, %c0_25] : memref<32x256xbf16, #tpu.memory_space<vmem>>, vector<32x256xbf16>
    tpu.vector_store %arg10[%c0_24, %c0_25], %45 {strides = array<i32>} : memref<32x256xbf16, #tpu.memory_space<vmem>>, vector<32x256xbf16>,
    return
  }
  func.func @transform_0(%arg0: i32) -> (i32, i32) {
    %c0_i32 = arith.constant 0 : i32
    %c0_i32_0 = arith.constant 0 : i32
    return %c0_i32, %arg0 : i32, i32
  }
  func.func @transform_1(%arg0: i32) -> (i32, i32) {
    %c0_i32 = arith.constant 0 : i32
    %c0_i32_0 = arith.constant 0 : i32
    return %c0_i32, %arg0 : i32, i32
  }
  func.func @transform_2(%arg0: i32) -> (i32, i32) {
    %c0_i32 = arith.constant 0 : i32
    %c0_i32_0 = arith.constant 0 : i32
    %c0_i32_1 = arith.constant 0 : i32
    return %c0_i32, %c0_i32_0 : i32, i32
  }
  func.func @transform_3(%arg0: i32) -> (i32, i32) {
    %c0_i32 = arith.constant 0 : i32
    %c0_i32_0 = arith.constant 0 : i32
    %c0_i32_1 = arith.constant 0 : i32
    return %c0_i32, %c0_i32_0 : i32, i32
  }
  func.func @transform_4(%arg0: i32) -> (i32, i32) {
    %c0_i32 = arith.constant 0 : i32
    %c0_i32_0 = arith.constant 0 : i32
    %c0_i32_1 = arith.constant 0 : i32
    return %c0_i32, %c0_i32_0 : i32, i32
  }
  func.func @transform_5(%arg0: i32) -> (i32, i32) {
    %c0_i32 = arith.constant 0 : i32
    %c0_i32_0 = arith.constant 0 : i32
    %c0_i32_1 = arith.constant 0 : i32
    return %c0_i32, %c0_i32_0 : i32, i32
  }
  func.func @transform_6(%arg0: i32) -> (i32, i32) {
    %c0_i32 = arith.constant 0 : i32
    %c0_i32_0 = arith.constant 0 : i32
    %c0_i32_1 = arith.constant 0 : i32
    return %c0_i32, %c0_i32_0 : i32, i32
  }
  func.func @transform_7(%arg0: i32) -> (i32, i32) {
    %c0_i32 = arith.constant 0 : i32
    %c0_i32_0 = arith.constant 0 : i32
    %c0_i32_1 = arith.constant 0 : i32
    return %c0_i32, %c0_i32_0 : i32, i32
  }
  func.func @transform_8(%arg0: i32) -> (i32, i32) {
    %c0_i32 = arith.constant 0 : i32
    %c0_i32_0 = arith.constant 0 : i32
    return %c0_i32, %arg0 : i32, i32
  }
  func.func @transform_9(%arg0: i32) -> (i32, i32) {
    %c0_i32 = arith.constant 0 : i32
    %c0_i32_0 = arith.constant 0 : i32
    return %c0_i32, %arg0 : i32, i32
  }
}

module attributes {stable_mosaic.version = 11 : i64} {
  func.func @_conv_out_kernel(%arg0: i32, %arg1: memref<288x256xbf16, #tpu.memory_space<vmem>>, %arg2: memref<2x288xbf16, #tpu.memory_space<vmem>>, %arg3: memref<2x1xf32, #tpu.memory_space<vmem>>, %arg4: memref<2x256xf32, #tpu.memory_space<vmem>>, %arg5: memref<2x256xf32, #tpu.memory_space<vmem>>) attributes {dimension_semantics = [#tpu.dimension_semantics<parallel>], iteration_bounds = array<i64: 2>, scalar_prefetch = 0 : i64, scratch_operands = 0 : i64, tpu.core_type = #tpu.core_type<tc>, window_params = [{transform_indices = @transform_0, window_bounds = array<i64: 288, 256>}, {pipeline_mode = #tpu.pipeline_mode<synchronous>, transform_indices = @transform_1, window_bounds = array<i64: 2, 288>}, {pipeline_mode = #tpu.pipeline_mode<synchronous>, transform_indices = @transform_2, window_bounds = array<i64: 2, 1>}, {transform_indices = @transform_3, window_bounds = array<i64: 2, 256>}, {transform_indices = @transform_4, window_bounds = array<i64: 2, 256>}]} {
    %c0 = arith.constant 0 : index
    %c0_0 = arith.constant 0 : index
    %0 = vector.load %arg2[%c0, %c0_0] : memref<2x288xbf16, #tpu.memory_space<vmem>>, vector<2x288xbf16>
    %c0_1 = arith.constant 0 : index
    %c0_2 = arith.constant 0 : index
    %1 = vector.load %arg1[%c0_1, %c0_2] : memref<288x256xbf16, #tpu.memory_space<vmem>>, vector<288x256xbf16>
    %cst = arith.constant dense<0.000000e+00> : vector<2x256xf32>
    %2 = tpu.matmul %0, %1, %cst {dimension_numbers = #tpu.dot_dimension_numbers<[1], [0], [0], [1], [0, 0, 1, 1], [], []>} : vector<2x288xbf16>, vector<288x256xbf16>, vector<2x256xf32> -> vector<2x256xf32>
    %c0_3 = arith.constant 0 : index
    %c0_4 = arith.constant 0 : index
    %3 = vector.load %arg3[%c0_3, %c0_4] : memref<2x1xf32, #tpu.memory_space<vmem>>, vector<2x1xf32>
    %4 = vector.broadcast %3 : vector<2x1xf32> to vector<2x256xf32>
    %5 = arith.addf %2, %4 : vector<2x256xf32>
    %c0_5 = arith.constant 0 : index
    %c0_6 = arith.constant 0 : index
    %6 = vector.load %arg4[%c0_5, %c0_6] : memref<2x256xf32, #tpu.memory_space<vmem>>, vector<2x256xf32>
    %7 = arith.addf %5, %6 : vector<2x256xf32>
    %c0_7 = arith.constant 0 : index
    %c0_8 = arith.constant 0 : index
    %8 = vector.load %arg5[%c0_7, %c0_8] : memref<2x256xf32, #tpu.memory_space<vmem>>, vector<2x256xf32>
    tpu.vector_store %arg5[%c0_7, %c0_8], %7 {strides = array<i32>} : memref<2x256xf32, #tpu.memory_space<vmem>>, vector<2x256xf32>,
    return
  }
  func.func @transform_0(%arg0: i32) -> (i32, i32) {
    %c0_i32 = arith.constant 0 : i32
    %c0_i32_0 = arith.constant 0 : i32
    return %c0_i32, %arg0 : i32, i32
  }
  func.func @transform_1(%arg0: i32) -> (i32, i32) {
    %c0_i32 = arith.constant 0 : i32
    %c0_i32_0 = arith.constant 0 : i32
    %c0_i32_1 = arith.constant 0 : i32
    return %c0_i32, %c0_i32_0 : i32, i32
  }
  func.func @transform_2(%arg0: i32) -> (i32, i32) {
    %c0_i32 = arith.constant 0 : i32
    %c0_i32_0 = arith.constant 0 : i32
    %c0_i32_1 = arith.constant 0 : i32
    return %c0_i32, %c0_i32_0 : i32, i32
  }
  func.func @transform_3(%arg0: i32) -> (i32, i32) {
    %c0_i32 = arith.constant 0 : i32
    %c0_i32_0 = arith.constant 0 : i32
    return %c0_i32, %arg0 : i32, i32
  }
  func.func @transform_4(%arg0: i32) -> (i32, i32) {
    %c0_i32 = arith.constant 0 : i32
    %c0_i32_0 = arith.constant 0 : i32
    return %c0_i32, %arg0 : i32, i32
  }
}

</mosaic_0001>

<bundles_post_ra>
// kernel: custom-call.1
= control target key start
LH: loop header
LB: loop body
LE: loop exit
PB: predicated region body
PF: predicated region fallthrough
CT: control target
= control target key end

     0   :  { %s56_s0 = inlined_call_operand.hbm [shape: c64[2,4,16,16], index: 0, kind: input, shape index: {}]   ;;  %s57_s1 = inlined_call_operand.vmem [shape: f32[2,4,16,16], index: 1, kind: output, shape index: {}]  }
   0x1   :  { %s2_s8 = scalar_lea.hbm %s56_s0, 128 }
   0x2   :  { %3 = vsyncpa [#allocation0], 0  ;;  %s5_s9 = sshll.u32 %s2_s8, 4  ;;  %s7_s12 = sshll.u32 %s57_s1, 4  ;;  %s6_s9 = int_to_ptr.hbm [resolvable:$true] %s5_s9  ;;  %s8_s12 = int_to_ptr.vmem [resolvable:$true] %s7_s12 }
   0x3   :  { %10 = dma.hbm_to_vmem [thread:$0]  %s6_s9, 2048, %s8_s12, [#allocation0] }
   0x4   :  { %38 = dma.done.wait [#allocation0], 2048  }
   0x5   :  { %39 = vsyncadd [#allocation0], 4294965248 }
   0x6   :  { %13 = vsyncpa [#allocation0], 1 }

// kernel: custom-call
= control target key start
LH: loop header
LB: loop body
LE: loop exit
PB: predicated region body
PF: predicated region fallthrough
CT: control target
= control target key end

     0   :  { %2 = vsyncpa [#allocation0], 0  ;;  %s55_s0 = inlined_call_operand.hbm [shape: c64[2,4,16,16], index: 0, kind: input, shape index: {}]   ;;  %s56_s1 = inlined_call_operand.vmem [shape: f32[2,4,16,16], index: 1, kind: output, shape index: {}]  }
   0x1   :  { %s4_s8 = sshll.u32 %s55_s0, 4  ;;  %s6_s11 = sshll.u32 %s56_s1, 4  ;;  %s5_s8 = int_to_ptr.hbm [resolvable:$true] %s4_s8  ;;  %s7_s11 = int_to_ptr.vmem [resolvable:$true] %s6_s11 }
   0x2   :  { %9 = dma.hbm_to_vmem [thread:$0]  %s5_s8, 2048, %s7_s11, [#allocation0] }
   0x3   :  { %37 = dma.done.wait [#allocation0], 2048  }
   0x4   :  { %38 = vsyncadd [#allocation0], 4294965248 }
   0x5   :  { %12 = vsyncpa [#allocation0], 1 }

// kernel: squeeze.17
= control target key start
LH: loop header
LB: loop body
LE: loop exit
PB: predicated region body
PF: predicated region fallthrough
CT: control target
= control target key end

     0   :  { %s110_s0 = inlined_call_operand.<no memory space> [shape: f32[], index: 0, kind: input, shape index: {}]   ;;  %s111_s1 = inlined_call_operand.vmem [shape: f32[32,512], index: 1, kind: output, shape index: {}]  }
   0x1   :  { %v2_v0 = vstv %s110_s0 }
   0x2   :  { %3 = vst [vmem:[%s111_s1] sm:$0xff] %v2_v0 }
   0x3   :  { %34 = vst [vmem:[%s111_s1 + $0x20] sm:$0xff] %v2_v0 }
   0x4   :  { %35 = vst [vmem:[%s111_s1 + $0x40] sm:$0xff] %v2_v0 }
   0x5   :  { %36 = vst [vmem:[%s111_s1 + $0x60] sm:$0xff] %v2_v0 }
   0x6   :  { %37 = vst [vmem:[%s111_s1 + $0x8] sm:$0xff] %v2_v0 }
   0x7   :  { %38 = vst [vmem:[%s111_s1 + $0x28] sm:$0xff] %v2_v0 }
   0x8   :  { %39 = vst [vmem:[%s111_s1 + $0x48] sm:$0xff] %v2_v0 }
   0x9   :  { %40 = vst [vmem:[%s111_s1 + $0x68] sm:$0xff] %v2_v0 }
   0xa   :  { %41 = vst [vmem:[%s111_s1 + $0x10] sm:$0xff] %v2_v0 }
   0xb   :  { %42 = vst [vmem:[%s111_s1 + $0x30] sm:$0xff] %v2_v0 }
   0xc   :  { %43 = vst [vmem:[%s111_s1 + $0x50] sm:$0xff] %v2_v0 }
   0xd   :  { %44 = vst [vmem:[%s111_s1 + $0x70] sm:$0xff] %v2_v0 }
   0xe   :  { %45 = vst [vmem:[%s111_s1 + $0x18] sm:$0xff] %v2_v0 }
   0xf   :  { %46 = vst [vmem:[%s111_s1 + $0x38] sm:$0xff] %v2_v0 }
  0x10   :  { %47 = vst [vmem:[%s111_s1 + $0x58] sm:$0xff] %v2_v0 }
  0x11   :  { %48 = vst [vmem:[%s111_s1 + $0x78] sm:$0xff] %v2_v0 }

// kernel: rim_forward.16
= control target key start
LH: loop header
LB: loop body
LE: loop exit
PB: predicated region body
PF: predicated region fallthrough
CT: control target
= control target key end

     0   :  { %s1854_s30 = smov 0   ;;  %s1856_s10 = smov 0   ;;  %s2579_s0 = inlined_call_operand.vmem [shape: bf16[128,512], index: 0, kind: input, shape index: {}]   ;;  %s2580_s1 = inlined_call_operand.vmem [shape: f32[32,512], index: 1, kind: input, shape index: {}]   ;;  %s2581_s2 = inlined_call_operand.vmem [shape: bf16[32,128], index: 2, kind: input, shape index: {}]   ;;  %s2582_s3 = inlined_call_operand.vmem [shape: f32[32,1], index: 3, kind: input, shape index: {}]   ;;  %s2583_s4 = inlined_call_operand.vmem [shape: bf16[64,64], index: 4, kind: input, shape index: {}]   ;;  %s2584_s5 = inlined_call_operand.vmem [shape: f32[64,1], index: 5, kind: input, shape index: {}]   ;;  %s2585_s6 = inlined_call_operand.vmem [shape: bf16[32,64], index: 6, kind: input, shape index: {}]   ;;  %s2586_s7 = inlined_call_operand.vmem [shape: f32[32,1], index: 7, kind: input, shape index: {}]   ;;  %s2587_s8 = inlined_call_operand.vmem [shape: f32[32,512], index: 8, kind: output, shape index: {0}]   ;;  %s2588_s9 = inlined_call_operand.vmem [shape: bf16[32,512], index: 9, kind: output, shape index: {1}]  }
   0x1   :  { %s1858_s11 = smov 0  }
   0x2 LB: > { %s1870_s12 = sadd.s32 4294967295, %s1801_s11   ;;  %s1873_s13 = sadd.s32 1, %s1801_s11   ;;  %s1801_s11 = sphi %s1858_s11, %s2643_s11   ;;  %s1797_s10 = sphi %s1856_s10, %s2642_s10   ;;  %s1793_s30 = sphi %s1854_s30, %s2641_s30  }
   0x3   : > { %s24_s14 = ssub.s32 %s1801_s11, %s1873_s13  ;;  %s27_s15 = sadd.s32 1, %s1797_s10 }
   0x4   : > { %p25_p0 = scmp.eq.s32.totalorder %s24_s14, 0  ;;  %p34_p1 = scmp.ne.s32.totalorder %s1797_s10, %s1793_s30 }
   0x5   : > { %p35_p2 = scmp.eq.s32.totalorder %s1801_s11, 0  ;;  %p216_p3 = scmp.eq.s32.totalorder %s1870_s12, 1 }
   0x6   : > { %s1883_s16 = scalar_select %p25_p0, %s1797_s10, %s27_s15  }
   0x7   : > { %p1885_p4 = por %p35_p2, %p34_p1  ;;  %p1889_p5 = por %p216_p3, %p34_p1 }
   0x8   : > { %p1497_p6 = scmp.ge.s32.totalorder %s1801_s11, 2 }
   0xa   : > { %282 = sbr.rel (%p1497_p6) target bundleno = 47 (0x2f), region = 40 }
   0xf   : > { %285 = sbr.rel (!%p1885_p4) target bundleno = 35 (0x23), region = 44  ;;  %s287_s19 = sand.u32 (%p1885_p4), 1, %s1797_s10  }
  0x10   : > { %s1641_s20 = sshll.u32 (%p1885_p4), %s1801_s11, 3  ;;  %s1498_s21 = sshll.u32 (%p1885_p4), %s287_s19, 7 }
  0x11   : > { %s1901_s24 = scalar_lea.vmem (%p1885_p4), %s2579_s0, %s1641_s20  ;;  %s289_s25 = scalar_lea.vmem (%p1885_p4), [#allocation2], %s1498_s21 }
  0x12   : > { %v351_v0 = vld [vmem:[%s1901_s24] sm:$0xff] (%p1885_p4)  ;;  %v353_v1 = vld [vmem:[%s1901_s24 + $0x10] sm:$0xff] (%p1885_p4) }
  0x13   : > { %v355_v2 = vld [vmem:[%s1901_s24 + $0x20] sm:$0xff] (%p1885_p4)  ;;  %352 = vst [vmem:[%s289_s25] sm:$0xff] (%p1885_p4), %v351_v0  ;;  %v357_v3 = vld [vmem:[%s1901_s24 + $0x30] sm:$0xff] (%p1885_p4) }
  0x14   : > { %354 = vst [vmem:[%s289_s25 + $0x8] sm:$0xff] %v353_v1  ;;  %v359_v4 = vld [vmem:[%s1901_s24 + $0x40] sm:$0xff]  ;;  %v361_v5 = vld [vmem:[%s1901_s24 + $0x50] sm:$0xff] }
  0x15   : > { %356 = vst [vmem:[%s289_s25 + $0x10] sm:$0xff] %v355_v2  ;;  %v363_v6 = vld [vmem:[%s1901_s24 + $0x60] sm:$0xff]  ;;  %v365_v7 = vld [vmem:[%s1901_s24 + $0x70] sm:$0xff] }
  0x16   : > { %358 = vst [vmem:[%s289_s25 + $0x18] sm:$0xff] %v357_v3  ;;  %v367_v8 = vld [vmem:[%s1901_s24 + $0x80] sm:$0xff]  ;;  %v369_v9 = vld [vmem:[%s1901_s24 + $0x90] sm:$0xff] }
  0x17   : > { %360 = vst [vmem:[%s289_s25 + $0x20] sm:$0xff] %v359_v4  ;;  %v371_v10 = vld [vmem:[%s1901_s24 + $0xa0] sm:$0xff]  ;;  %v373_v11 = vld [vmem:[%s1901_s24 + $0xb0] sm:$0xff] }
  0x18   : > { %362 = vst [vmem:[%s289_s25 + $0x28] sm:$0xff] %v361_v5  ;;  %v375_v12 = vld [vmem:[%s1901_s24 + $0xc0] sm:$0xff]  ;;  %v377_v13 = vld [vmem:[%s1901_s24 + $0xd0] sm:$0xff] }
  0x19   : > { %364 = vst [vmem:[%s289_s25 + $0x30] sm:$0xff] %v363_v6  ;;  %v379_v14 = vld [vmem:[%s1901_s24 + $0xe0] sm:$0xff]  ;;  %v381_v15 = vld [vmem:[%s1901_s24 + $0xf0] sm:$0xff] }
  0x1a   : > { %366 = vst [vmem:[%s289_s25 + $0x38] sm:$0xff] %v365_v7 }
  0x1b   : > { %368 = vst [vmem:[%s289_s25 + $0x40] sm:$0xff] %v367_v8 }
  0x1c   : > { %370 = vst [vmem:[%s289_s25 + $0x48] sm:$0xff] %v369_v9 }
  0x1d   : > { %372 = vst [vmem:[%s289_s25 + $0x50] sm:$0xff] %v371_v10 }
  0x1e   : > { %374 = vst [vmem:[%s289_s25 + $0x58] sm:$0xff] %v373_v11 }
  0x1f   : > { %376 = vst [vmem:[%s289_s25 + $0x60] sm:$0xff] %v375_v12 }
  0x20   : > { %378 = vst [vmem:[%s289_s25 + $0x68] sm:$0xff] %v377_v13 }
  0x21   : > { %380 = vst [vmem:[%s289_s25 + $0x70] sm:$0xff] %v379_v14 }
  0x22   : > { %382 = vst [vmem:[%s289_s25 + $0x78] sm:$0xff] %v381_v15 }
  0x23 PF: > { %388 = sbr.rel (!%p1885_p4) target bundleno = 47 (0x2f), region = 82  ;;  %s390_s26 = sand.u32 (%p1885_p4), 1, %s1797_s10  }
  0x24   : > { %s1642_s27 = sshll.u32 (%p1885_p4), %s1801_s11, 4  ;;  %s1501_s28 = sshll.u32 (%p1885_p4), %s390_s26, 6 }
  0x25   : > { %s395_s15 = scalar_lea.vmem (%p1885_p4), %s2580_s1, %s1642_s27  ;;  %s392_s19 = scalar_lea.vmem (%p1885_p4), [#allocation3], %s1501_s28 }
  0x26   : > { %v408_v16 = vld [vmem:[%s395_s15] sm:$0xff] (%p1885_p4)  ;;  %v410_v17 = vld [vmem:[%s395_s15 + $0x8] sm:$0xff] (%p1885_p4) }
  0x27   : > { %v412_v18 = vld [vmem:[%s395_s15 + $0x20] sm:$0xff] (%p1885_p4)  ;;  %409 = vst [vmem:[%s392_s19] sm:$0xff] (%p1885_p4), %v408_v16  ;;  %v414_v19 = vld [vmem:[%s395_s15 + $0x28] sm:$0xff] (%p1885_p4) }
  0x28   : > { %411 = vst [vmem:[%s392_s19 + $0x8] sm:$0xff] %v410_v17  ;;  %v416_v20 = vld [vmem:[%s395_s15 + $0x40] sm:$0xff]  ;;  %v418_v21 = vld [vmem:[%s395_s15 + $0x48] sm:$0xff] }
  0x29   : > { %413 = vst [vmem:[%s392_s19 + $0x10] sm:$0xff] %v412_v18  ;;  %v420_v22 = vld [vmem:[%s395_s15 + $0x60] sm:$0xff]  ;;  %v422_v23 = vld [vmem:[%s395_s15 + $0x68] sm:$0xff] }
  0x2a   : > { %415 = vst [vmem:[%s392_s19 + $0x18] sm:$0xff] %v414_v19 }
  0x2b   : > { %417 = vst [vmem:[%s392_s19 + $0x20] sm:$0xff] %v416_v20 }
  0x2c   : > { %419 = vst [vmem:[%s392_s19 + $0x28] sm:$0xff] %v418_v21 }
  0x2d   : > { %421 = vst [vmem:[%s392_s19 + $0x30] sm:$0xff] %v420_v22 }
  0x2e   : > { %423 = vst [vmem:[%s392_s19 + $0x38] sm:$0xff] %v422_v23 }
  0x2f PF: > { %p1504_p7 = scmp.ge.s32.totalorder %s1801_s11, 1  ;;  %p428_p8 = scmp.lt.s32.totalorder %s1801_s11, 3 }
  0x31   : > { %p429_p9 = pnand %p1504_p7, %p428_p8 }
  0x32   : > { %s1929_s17 = sand.u32 (!%p429_p9), 1, %s1793_s30  }
  0x33   : > { %432 = sbr.rel (%p429_p9) target bundleno = 673 (0x2a1), region = 105  ;;  %s1505_s22 = sshll.u32 (!%p429_p9), %s1929_s17, 7 }
  0x34   : > { %s1935_s23 = scalar_lea.vmem (!%p429_p9), [#allocation2], %s1505_s22  ;;  %s1506_s15 = sshll.u32 (!%p429_p9), %s1929_s17, 6 }
  0x35   : > { %s2008_s19 = scalar_lea.vmem (!%p429_p9), [#allocation3], %s1506_s15  ;;  %s2484_s27 = scalar_lea.vmem (!%p429_p9), [#allocation4], %s1506_s15 }
  0x36   : > { %s1508_s28 = sshll.u32 (!%p429_p9), %s1929_s17, 5 }
  0x37   : > { %s2503_s17 = scalar_lea.vmem (!%p429_p9), [#allocation5], %s1508_s28 }
  0x38   : > { %v511_v24 = vld [vmem:[%s2582_s3 + $0x10] sm:$0xff]  ;;  %v1803_v25 = vmov 0   ;;  %v1660_v27 = vld [vmem:[%s1935_s23 + $0x74] sm:$0xf0]  ;;  %v1577_v30 = vld [vmem:[%s1935_s23 + $0x78] sm:$0xf0] }
  0x39   : > { %1694 = vset.pattern.permute.xlu0 %v1803_v25  ;;  %1695 = vset.pattern.permute.xlu1 %v1803_v25  ;;  %v1575_v26 = vld [vmem:[%s1935_s23 + $0x70] sm:$0xf]  ;;  %v1659_v28 = vld [vmem:[%s1935_s23 + $0x74] sm:$0xf]  ;;  %v1567_v31 = vld [vmem:[%s1935_s23 + $0x60] sm:$0xf] }
  0x3a   : > { %525 = vperm.xlu0 %1694, %v511_v24   ;;  %1696 = vset.pattern.permute.xlu2 %v1803_v25  ;;  %v1576_v29 = vor.u32 %v1660_v27, %v1575_v26  ;;  %v1658_v32 = vld [vmem:[%s1935_s23 + $0x64] sm:$0xf0]  ;;  %v1580_v33 = vor.u32 %v1659_v28, %v1577_v30  ;;  %v1657_v34 = vld [vmem:[%s1935_s23 + $0x64] sm:$0xf]  ;;  %v1569_v35 = vld [vmem:[%s1935_s23 + $0x68] sm:$0xf0] }
  0x3b   : > { %v1568_v36 = vor.u32 %v1658_v32, %v1567_v31  ;;  %v1572_v37 = vor.u32 %v1657_v34, %v1569_v35  ;;  %v1559_v38 = vld [vmem:[%s1935_s23 + $0x50] sm:$0xf]  ;;  %v1656_v39 = vld [vmem:[%s1935_s23 + $0x54] sm:$0xf0]  ;;  %v1655_v41 = vld [vmem:[%s1935_s23 + $0x54] sm:$0xf] }
  0x3c   : > { %625 = vmatpush.bf16.msra.mxu0 %v1576_v29  ;;  %644 = vmatpush.bf16.msra.mxu1 %v1580_v33  ;;  %v512_v40 = vld [vmem:[%s2582_s3 + $0x18] sm:$0xff]  ;;  %v1560_v43 = vor.u32 %v1656_v39, %v1559_v38  ;;  %v1551_v45 = vld [vmem:[%s1935_s23 + $0x40] sm:$0xf]  ;;  %v1654_v46 = vld [vmem:[%s1935_s23 + $0x44] sm:$0xf0]  ;;  %vm2589_vm0 = vcmask 523264  }
  0x3d   : > { %v1561_v42 = vld [vmem:[%s1935_s23 + $0x58] sm:$0xf0]  ;;  %v1653_v47 = vld [vmem:[%s1935_s23 + $0x44] sm:$0xf]  ;;  %v1553_v48 = vld [vmem:[%s1935_s23 + $0x48] sm:$0xf0]  ;;  %v1552_v50 = vor.u32 %v1654_v46, %v1551_v45 }
  0x3e   : > { %v1564_v44 = vor.u32 %v1655_v41, %v1561_v42  ;;  %v509_v49 = vld [vmem:[%s2582_s3] sm:$0xff]  ;;  %v1556_v51 = vor.u32 %v1653_v47, %v1553_v48  ;;  %v1543_v52 = vld [vmem:[%s1935_s23 + $0x30] sm:$0xf]  ;;  %v1652_v53 = vld [vmem:[%s1935_s23 + $0x34] sm:$0xf0]  ;;  %s1667_s15 = sshll.u32 (%p1889_p5), %s1870_s12, 4 }
  0x3f   : > { %515 = vperm.xlu1 %1695, %v509_v49   ;;  %v699_v54 = vld [vmem:[%s2584_s5 + $0x20] sm:$0xff]  ;;  %v1651_v55 = vld [vmem:[%s1935_s23 + $0x34] sm:$0xf]  ;;  %v1545_v56 = vld [vmem:[%s1935_s23 + $0x38] sm:$0xf0]  ;;  %v1544_v57 = vor.u32 %v1652_v53, %v1543_v52  ;;  %s1309_s14 = scalar_lea.vmem (%p1889_p5), %s2587_s8, %s1667_s15 }
  0x40   : > { %626 = vmatpush.bf16.msra.mxu0 %v1568_v36  ;;  %645 = vmatpush.bf16.msra.mxu1 %v1572_v37  ;;  %v1548_v58 = vor.u32 %v1651_v55, %v1545_v56  ;;  %v1535_v59 = vld [vmem:[%s1935_s23 + $0x20] sm:$0xf]  ;;  %v1650_v60 = vld [vmem:[%s1935_s23 + $0x24] sm:$0xf0]  ;;  %v1649_v62 = vld [vmem:[%s1935_s23 + $0x24] sm:$0xf] }
  0x41   : > { %v510_v61 = vld [vmem:[%s2582_s3 + $0x8] sm:$0xff]  ;;  %v1536_v0 = vor.u32 %v1650_v60, %v1535_v59  ;;  %v1527_v2 = vld [vmem:[%s1935_s23 + $0x10] sm:$0xf]  ;;  %v1648_v3 = vld [vmem:[%s1935_s23 + $0x14] sm:$0xf0] }
  0x42   : > { %530 = vperm.xlu0 %1694, %v512_v40   ;;  %v1537_v63 = vld [vmem:[%s1935_s23 + $0x28] sm:$0xf0]  ;;  %v1647_v5 = vld [vmem:[%s1935_s23 + $0x14] sm:$0xf]  ;;  %v1529_v6 = vld [vmem:[%s1935_s23 + $0x18] sm:$0xf0]  ;;  %v1528_v7 = vor.u32 %v1648_v3, %v1527_v2 }
  0x43   : > { %v1540_v1 = vor.u32 %v1649_v62, %v1537_v63  ;;  %v696_v4 = vld [vmem:[%s2584_s5 + $0x8] sm:$0xff]  ;;  %v1532_v8 = vor.u32 %v1647_v5, %v1529_v6  ;;  %v1519_v9 = vld [vmem:[%s1935_s23] sm:$0xf]  ;;  %v1645_v12 = vld [vmem:[%s1935_s23 + $0x4] sm:$0xf] }
  0x44   : > { %627 = vmatpush.bf16.msra.mxu0 %v1560_v43  ;;  %646 = vmatpush.bf16.msra.mxu1 %v1564_v44  ;;  %v1646_v10 = vld [vmem:[%s1935_s23 + $0x4] sm:$0xf0]  ;;  %v1521_v13 = vld [vmem:[%s1935_s23 + $0x8] sm:$0xf0]  ;;  %v1154_v16 = vld [vmem:[%s2586_s7] sm:$0xff] }
  0x45   : > { %v700_v11 = vld [vmem:[%s2584_s5 + $0x28] sm:$0xff]  ;;  %v1520_v14 = vor.u32 %v1646_v10, %v1519_v9  ;;  %v1524_v15 = vor.u32 %v1645_v12, %v1521_v13  ;;  %v1643_v17 = vld [vmem:[%s2581_s2] sm:$0xff]  ;;  %v697_v18 = vld [vmem:[%s2584_s5 + $0x10] sm:$0xff] }
  0x46   : > { %v1157_v19 = vld [vmem:[%s2586_s7 + $0x18] sm:$0xff]  ;;  %v1155_v20 = vld [vmem:[%s2586_s7 + $0x8] sm:$0xff]  ;;  %v2011_v22 = vld [vmem:[%s2008_s19 + $0x20] sm:$0xff] }
  0x47   : > { %520 = vperm.xlu1 %1695, %v510_v61   ;;  %v1644_v21 = vld [vmem:[%s2581_s2 + $0x8] sm:$0xff]  ;;  %v2014_v23 = vld [vmem:[%s2008_s19 + $0x30] sm:$0xff]  ;;  %v2022_v26 = vld [vmem:[%s2008_s19 + $0x38] sm:$0xff] }
  0x48   : > { %628 = vmatpush.bf16.msra.mxu0 %v1552_v50  ;;  %647 = vmatpush.bf16.msra.mxu1 %v1556_v51  ;;  %v2017_v24 = vld [vmem:[%s2008_s19 + $0x28] sm:$0xff]  ;;  %v685_v25 = vpack.c.bf16 %v2014_v23, %v2011_v22  ;;  %v2027_v28 = vld [vmem:[%s2008_s19] sm:$0xff]  ;;  %v2030_v29 = vld [vmem:[%s2008_s19 + $0x10] sm:$0xff] }
  0x49   : > { %v686_v27 = vpack.c.bf16 %v2022_v26, %v2017_v24  ;;  %v2033_v30 = vld [vmem:[%s2008_s19 + $0x8] sm:$0xff]  ;;  %v683_v31 = vpack.c.bf16 %v2030_v29, %v2027_v28  ;;  %v2038_v32 = vld [vmem:[%s2008_s19 + $0x18] sm:$0xff]  ;;  %v701_v44 = vld [vmem:[%s2584_s5 + $0x30] sm:$0xff] }
  0x4a   : > { %725 = vperm.xlu0 %1694, %v699_v54   ;;  %780 = vmatpush.bf16.msra.mxu2 %v685_v25  ;;  %v684_v33 = vpack.c.bf16 %v2038_v32, %v2033_v30  ;;  %v1661_v3 = vld [vmem:[%s2583_s4] sm:$0xff]  ;;  %v1662_v6 = vld [vmem:[%s2583_s4 + $0x8] sm:$0xff]  ;;  %v1663_v9 = vld [vmem:[%s2583_s4 + $0x10] sm:$0xff] }
  0x4b   : > { %809 = vmatpush.bf16.msra.mxu3 %v686_v27  ;;  %735 = vperm.xlu2 %1696, %v701_v44   ;;  %v695_v5 = vld [vmem:[%s2584_s5] sm:$0xff]  ;;  %v1664_v10 = vld [vmem:[%s2583_s4 + $0x18] sm:$0xff] }
  0x4c   : > { %629 = vmatpush.bf16.msra.mxu0 %v1544_v57  ;;  %648 = vmatpush.bf16.msra.mxu1 %v1548_v58 }
  0x4e   : > { %781 = vmatpush.bf16.msra.mxu2 %v683_v31 }
  0x4f   : > { %730 = vperm.xlu1 %1695, %v700_v11   ;;  %810 = vmatpush.bf16.msra.mxu3 %v684_v33 }
  0x50   : > { %630 = vmatpush.bf16.msra.mxu0 %v1536_v0  ;;  %649 = vmatpush.bf16.msra.mxu1 %v1540_v1 }
  0x52   : > { %710 = vperm.xlu0 %1694, %v696_v4   ;;  %v702_v4 = vld [vmem:[%s2584_s5 + $0x38] sm:$0xff] }
  0x53   : > { %740 = vperm.xlu2 %1696, %v702_v4  }
  0x54   : > { %631 = vmatpush.bf16.msra.mxu0 %v1528_v7  ;;  %650 = vmatpush.bf16.msra.mxu1 %v1532_v8  ;;  %v698_v7 = vld [vmem:[%s2584_s5 + $0x18] sm:$0xff]  ;;  %v1156_v8 = vld [vmem:[%s2586_s7 + $0x10] sm:$0xff] }
  0x57   : > { %715 = vperm.xlu1 %1695, %v697_v18  }
  0x58   : > { %632 = vmatpush.bf16.msra.mxu0 %v1520_v14  ;;  %651 = vmatpush.bf16.msra.mxu1 %v1524_v15 }
  0x5a   : > { %1160 = vperm.xlu0 %1694, %v1154_v16  }
  0x5b   : > { %633 = vmatmul.bf16.vlgmr.msra.gmra.mxu0 %v1643_v17  ;;  %652 = vmatmul.bf16.vlgmr.msra.gmra.mxu1 %v1643_v17 }
  0x5c   : > { %705 = vperm.xlu2 %1696, %v695_v5  }
  0x5f   : > { %1165 = vperm.xlu1 %1695, %v1155_v20  }
  0x62   : > { %1175 = vperm.xlu0 %1694, %v1157_v19  }
  0x64   : > { %720 = vperm.xlu2 %1696, %v698_v7  }
  0x6b   : > { %638 = vmatmul.bf16.gmra.mxu0 %v1644_v21  ;;  %657 = vmatmul.bf16.gmra.mxu1 %v1644_v21 }
  0x6c   : > { %1170 = vperm.xlu2 %1696, %v1156_v8  }
  0xac   : > { %v526_v38 = vpop.permute.xlu0 %525 }
  0xb1   : > { %v516_v39 = vpop.permute.xlu1 %515 }
  0xb4   : > { %v531_v42 = vpop.permute.xlu0 %530 }
  0xb9   : > { %v521_v45 = vpop.permute.xlu1 %520 }
  0xbc   : > { %v726_v19 = vpop.permute.xlu0 %725 }
  0xd8   : > { %v634_v34 = vpop.f32.mrf.mxu0  ;;  %v653_v35 = vpop.f32.mrf.mxu1 }
  0xd9   : > { %v635_v53 = vadd.f32 %v634_v34, %v516_v39  ;;  %v654_v56 = vadd.f32 %v653_v35, %v516_v39  ;;  %v731_v34 = vpop.permute.xlu1 %730 }
  0xdb   : > { %v663_v63 = vmax.f32 %v635_v53, 0.0  ;;  %v664_v0 = vmax.f32 %v654_v56, 0.0 }
  0xe0   : > { %v636_v36 = vpop.f32.mrf.mxu0  ;;  %v655_v37 = vpop.f32.mrf.mxu1 }
  0xe1   : > { %v637_v48 = vadd.f32 %v636_v36, %v521_v45  ;;  %v656_v51 = vadd.f32 %v655_v37, %v521_v45 }
  0xe3   : > { %v665_v59 = vmax.f32 %v637_v48, 0.0  ;;  %v666_v61 = vmax.f32 %v656_v51, 0.0 }
  0xe5   : > { %v2051_v1 = vpack.c.bf16 %v665_v59, %v663_v63  ;;  %v2053_v2 = vpack.c.bf16 %v666_v61, %v664_v0 }
  0xe8   : > { %v639_v40 = vpop.f32.mrf.mxu0  ;;  %v658_v41 = vpop.f32.mrf.mxu1 }
  0xe9   : > { %v640_v43 = vadd.f32 %v639_v40, %v526_v38  ;;  %v659_v46 = vadd.f32 %v658_v41, %v526_v38 }
  0xeb   : > { %v667_v54 = vmax.f32 %v640_v43, 0.0  ;;  %v668_v57 = vmax.f32 %v659_v46, 0.0 }
  0xf0   : > { %v641_v47 = vpop.f32.mrf.mxu0  ;;  %v660_v50 = vpop.f32.mrf.mxu1 }
  0xf1   : > { %v642_v49 = vadd.f32 %v641_v47, %v531_v42  ;;  %v661_v52 = vadd.f32 %v660_v50, %v531_v42  ;;  %v736_v42 = vpop.permute.xlu2 %735 }
  0xf3   : > { %v669_v55 = vmax.f32 %v642_v49, 0.0  ;;  %v670_v58 = vmax.f32 %v661_v52, 0.0 }
  0xf5   : > { %v2045_v60 = vpack.c.bf16 %v669_v55, %v667_v54  ;;  %v2047_v62 = vpack.c.bf16 %v670_v58, %v668_v57 }
  0xf7   : > { %782 = vmatpush.bf16.msra.mxu2 %v2045_v60  ;;  %811 = vmatpush.bf16.msra.mxu3 %v2047_v62 }
  0xf9   : > { %v741_v57 = vpop.permute.xlu2 %740 }
  0xfb   : > { %783 = vmatpush.bf16.msra.mxu2 %v2051_v1  ;;  %812 = vmatpush.bf16.msra.mxu3 %v2053_v2 }
  0xfe   : > { %1597 = vmatmul.msk.bf16.vlgmr.msra.gmra.mxu2 %vm2589_vm0, %v1661_v3  ;;  %1601 = vmatmul.msk.bf16.vlgmr.msra.gmra.mxu3 %vm2589_vm0, %v1661_v3 }
 0x10e   : > { %1598 = vmatmul.msk.bf16.gmra.mxu2 %vm2589_vm0, %v1662_v6  ;;  %1602 = vmatmul.msk.bf16.gmra.mxu3 %vm2589_vm0, %v1662_v6 }
 0x11e   : > { %1599 = vmatmul.msk.bf16.gmra.mxu2 %vm2589_vm0, %v1663_v9  ;;  %1603 = vmatmul.msk.bf16.gmra.mxu3 %vm2589_vm0, %v1663_v9 }
 0x12e   : > { %1600 = vmatmul.msk.bf16.gmra.mxu2 %vm2589_vm0, %v1664_v10  ;;  %1604 = vmatmul.msk.bf16.gmra.mxu3 %vm2589_vm0, %v1664_v10 }
 0x181   : > { %v2089_v11 = vpop.f32.mrf.mxu2  ;;  %v2091_v12 = vpop.f32.mrf.mxu3 }
 0x189   : > { %v2093_v13 = vpop.f32.mrf.mxu2  ;;  %v2095_v14 = vpop.f32.mrf.mxu3 }
 0x191   : > { %v2097_v15 = vpop.f32.mrf.mxu2  ;;  %v2099_v16 = vpop.f32.mrf.mxu3 }
 0x199   : > { %v2101_v17 = vpop.f32.mrf.mxu2  ;;  %v2103_v18 = vpop.f32.mrf.mxu3 }
 0x1a1   : > { %v795_v20 = vpop.f32.mrf.mxu2  ;;  %v824_v25 = vpop.f32.mrf.mxu3 }
 0x1a2   : > { %v796_v21 = vadd.f32 %v795_v20, %v726_v19  ;;  %v825_v31 = vadd.f32 %v824_v25, %v726_v19 }
 0x1a4   : > { %v1613_v27 = vmul.f32 -1.442695, %v796_v21  ;;  %v1614_v33 = vmul.f32 -1.442695, %v825_v31 }
 0x1a6   : > { %1697 = vpow2.f32 %v1613_v27 }
 0x1a7   : > { %1699 = vpow2.f32 %v1614_v33 }
 0x1a9   : > { %v797_v35 = vpop.f32.mrf.mxu2  ;;  %v826_v37 = vpop.f32.mrf.mxu3 }
 0x1aa   : > { %v798_v36 = vadd.f32 %v797_v35, %v731_v34  ;;  %v827_v38 = vadd.f32 %v826_v37, %v731_v34 }
 0x1ac   : > { %v1698_v39 = vpop.eup %1697  ;;  %v1615_v40 = vmul.f32 -1.442695, %v798_v36  ;;  %v1616_v41 = vmul.f32 -1.442695, %v827_v38 }
 0x1ad   : > { %v2105_v43 = vadd.f32 1.0, %v1698_v39  ;;  %v1700_v45 = vpop.eup %1699 }
 0x1ae   : > { %1701 = vpow2.f32 %v1615_v40  ;;  %v2108_v51 = vadd.f32 1.0, %v1700_v45 }
 0x1af   : > { %1703 = vpow2.f32 %v1616_v41  ;;  %v1029_v20 = vand.u32 2147483648, %v2105_v43  ;;  %vm1023_vm1 = vweird.f32 %v2105_v43  ;;  %v1027_v34 = vand.u32 2147483647, %v2105_v43 }
 0x1b0   : > { %1705 = vrcp.f32 %v2105_v43  ;;  %v1042_v36 = vand.u32 2147483647, %v2108_v51  ;;  %vm1038_vm3 = vweird.f32 %v2108_v51 }
 0x1b1   : > { %v800_v44 = vpop.f32.mrf.mxu2  ;;  %v829_v47 = vpop.f32.mrf.mxu3  ;;  %v2141_v35 = vor.u32 1.1754944e-38, %v1029_v20 }
 0x1b2   : > { %v801_v46 = vadd.f32 %v800_v44, %v736_v42  ;;  %v830_v48 = vadd.f32 %v829_v47, %v736_v42 }
 0x1b4   : > { %v1702_v49 = vpop.eup %1701  ;;  %v1617_v50 = vmul.f32 -1.442695, %v801_v46  ;;  %v1618_v52 = vmul.f32 -1.442695, %v830_v48 }
 0x1b5   : > { %v1704_v53 = vpop.eup %1703  ;;  %v2110_v54 = vadd.f32 1.0, %v1702_v49 }
 0x1b6   : > { %1707 = vpow2.f32 %v1617_v50  ;;  %v2112_v55 = vadd.f32 1.0, %v1704_v53  ;;  %v2114_v56 = vpop.eup %1705 }
 0x1b7   : > { %1709 = vpow2.f32 %v1618_v52  ;;  %v1019_v4 = vmul.f32 %v2114_v56, %v2105_v43  ;;  %v1059_v39 = vand.u32 2147483648, %v2110_v54  ;;  %vm1024_vm2 = vweird.f32 %v2114_v56 }
 0x1b8   : > { %1711 = vrcp.f32 %v2108_v51  ;;  %v1057_v45 = vand.u32 2147483647, %v2110_v54  ;;  %v1074_v50 = vand.u32 2147483648, %v2112_v55  ;;  %vm1053_vm5 = vweird.f32 %v2110_v54  ;;  %vm2182_vm6 = vmor %vm1023_vm1, %vm1024_vm2 }
 0x1b9   : > { %v802_v58 = vpop.f32.mrf.mxu2  ;;  %1713 = vrcp.f32 %v2110_v54  ;;  %v831_v61 = vpop.f32.mrf.mxu3  ;;  %v1020_v19 = vsub.f32 1.0, %v1019_v4  ;;  %v1072_v4 = vand.u32 2147483647, %v2112_v55  ;;  %vm2222_vm2 = vcmp.eq.f32.partialorder %v1027_v34, 8.507059e+37 }
 0x1ba   : > { %v803_v59 = vadd.f32 %v802_v58, %v741_v57  ;;  %v832_v63 = vadd.f32 %v831_v61, %v741_v57  ;;  %1715 = vrcp.f32 %v2112_v55  ;;  %vm2208_vm13 = vcmp.eq.f32.partialorder %v1057_v45, 8.507059e+37 }
 0x1bb   : > { %v1021_v33 = vmul.f32 %v2114_v56, %v1020_v19  ;;  %vm2234_vm7 = vcmp.eq.f32.partialorder %v1072_v4, 8.507059e+37 }
 0x1bc   : > { %v1708_v0 = vpop.eup %1707  ;;  %v1619_v3 = vmul.f32 -1.442695, %v803_v59  ;;  %v1620_v6 = vmul.f32 -1.442695, %v832_v63  ;;  %v2172_v59 = vor.u32 1.1754944e-38, %v1059_v39 }
 0x1bd   : > { %v2121_v5 = vadd.f32 1.0, %v1708_v0  ;;  %v1710_v7 = vpop.eup %1709  ;;  %v2166_v57 = vadd.f32 %v2114_v56, %v1021_v33 }
 0x1be   : > { %1717 = vpow2.f32 %v1619_v3  ;;  %v2123_v8 = vpop.eup %1711  ;;  %v2126_v9 = vadd.f32 1.0, %v1710_v7 }
 0x1bf   : > { %1719 = vrcp.f32 %v2121_v5  ;;  %v2128_v10 = vpop.eup %1713  ;;  %v1034_v25 = vmul.f32 %v2123_v8, %v2108_v51  ;;  %vm1039_vm4 = vweird.f32 %v2123_v8  ;;  %v1087_v58 = vand.u32 2147483647, %v2121_v5 }
 0x1c0   : > { %1721 = vpow2.f32 %v1620_v6  ;;  %v2132_v21 = vpop.eup %1715  ;;  %v1049_v27 = vmul.f32 %v2128_v10, %v2110_v54  ;;  %v1089_v0 = vand.u32 2147483648, %v2121_v5  ;;  %v1102_v6 = vand.u32 2147483647, %v2126_v9  ;;  %vm2230_vm0 = vmor %vm1038_vm3, %vm1039_vm4 }
 0x1c1   : > { %1723 = vrcp.f32 %v2126_v9  ;;  %v1064_v41 = vmul.f32 %v2132_v21, %v2112_v55  ;;  %v1035_v46 = vsub.f32 1.0, %v1034_v25  ;;  %v2189_v25 = vor.u32 1.1754944e-38, %v1074_v50 }
 0x1c2   : > { %v1050_v49 = vsub.f32 1.0, %v1049_v27  ;;  %vm1083_vm8 = vweird.f32 %v2121_v5  ;;  %vm1054_vm9 = vweird.f32 %v2128_v10  ;;  %vm2198_vm10 = vcmp.eq.f32.partialorder %v1087_v58, 8.507059e+37 }
 0x1c3   : > { %v1065_v61 = vsub.f32 1.0, %v1064_v41  ;;  %v1036_v20 = vmul.f32 %v2123_v8, %v1035_v46  ;;  %vm1098_vm11 = vweird.f32 %v2126_v9  ;;  %v1104_v39 = vand.u32 2147483648, %v2126_v9  ;;  %vm2256_vm4 = vmor %vm1053_vm5, %vm1054_vm9 }
 0x1c4   : > { %v1718_v31 = vpop.eup %1717  ;;  %v1051_v19 = vmul.f32 %v2128_v10, %v1050_v49  ;;  %vm2212_vm14 = vcmp.eq.f32.partialorder %v1102_v6, 8.507059e+37  ;;  %vm2614_vm9 = vweird.f32 %v2132_v21 }
 0x1c5   : > { %v2144_v37 = vpop.eup %1719  ;;  %v2146_v38 = vadd.f32 1.0, %v1718_v31  ;;  %v1066_v41 = vmul.f32 %v2132_v21, %v1065_v61  ;;  %v1037_v58 = vadd.f32 %v2123_v8, %v1036_v20 }
 0x1c6   : > { %v1722_v42 = vpop.eup %1721  ;;  %v1079_v44 = vmul.f32 %v2144_v37, %v2121_v5  ;;  %vm1084_vm12 = vweird.f32 %v2144_v37 }
 0x1c7   : > { %v2156_v47 = vpop.eup %1723  ;;  %1725 = vrcp.f32 %v2146_v38  ;;  %v2159_v48 = vadd.f32 1.0, %v1722_v42  ;;  %vm2242_vm15 = vmor %vm1083_vm8, %vm1084_vm12  ;;  %v1119_v20 = vand.u32 2147483648, %v2146_v38  ;;  %vm2262_vm8 = vcmp.eq.f32.partialorder %v1042_v36, 8.507059e+37 }
 0x1c8   : > { %v1080_v52 = vsub.f32 1.0, %v1079_v44  ;;  %v1094_v53 = vmul.f32 %v2156_v47, %v2126_v9  ;;  %v1090_v44 = vor.u32 1.1754944e-38, %v1089_v0  ;;  %vm1099_vm1 = vweird.f32 %v2156_v47 }
 0x1c9   : > { %1727 = vrcp.f32 %v2159_v48  ;;  %vm1113_vm12 = vweird.f32 %v2146_v38  ;;  %v1132_v54 = vand.u32 2147483647, %v2159_v48 }
 0x1ca   : > { %v1081_v63 = vmul.f32 %v2144_v37, %v1080_v52  ;;  %v1095_v3 = vsub.f32 1.0, %v1094_v53  ;;  %v1052_v53 = vadd.f32 %v2128_v10, %v1051_v19  ;;  %v1117_v19 = vand.u32 2147483647, %v2146_v38 }
 0x1cc   : > { %v1096_v27 = vmul.f32 %v2156_v47, %v1095_v3  ;;  %v1082_v42 = vadd.f32 %v2144_v37, %v1081_v63  ;;  %v1056_v36 = vsel %vm2256_vm4, %v2128_v10, %v1052_v53  ;;  %v1120_v10 = vor.u32 1.1754944e-38, %v1119_v20 }
 0x1cd   : > { %v1726_v31 = vpop.eup %1725  ;;  %v2619_v3 = vand.u32 2147483648, %v2108_v51 }
 0x1ce   : > { %v1109_v46 = vmul.f32 %v1726_v31, %v2146_v38  ;;  %v1097_v63 = vadd.f32 %v2156_v47, %v1096_v27  ;;  %v1105_v27 = vor.u32 1.1754944e-38, %v1104_v39  ;;  %v1086_v4 = vsel %vm2242_vm15, %v2144_v37, %v1082_v42  ;;  %vm2271_vm15 = vmor %vm1098_vm11, %vm1099_vm1 }
 0x1cf   : > { %v1728_v50 = vpop.eup %1727  ;;  %vm1114_vm3 = vweird.f32 %v1726_v31  ;;  %v2610_v39 = vmov 0  ;;  %vm2615_vm11 = vweird.f32 %v2112_v55  ;;  %v1045_v49 = vor.u32 1.1754944e-38, %v2619_v3 }
 0x1d0   : > { %v1110_v61 = vsub.f32 1.0, %v1109_v46  ;;  %v1124_v45 = vmul.f32 %v1728_v50, %v2159_v48  ;;  %v1067_v46 = vadd.f32 %v2132_v21, %v1066_v41  ;;  %v2611_v39 = vsel %vm2262_vm8, 4294967295, %v2610_v39  ;;  %vm2287_vm1 = vmor %vm2615_vm11, %vm2614_vm9 }
 0x1d1   : > { %v1134_v41 = vand.u32 2147483648, %v2159_v48  ;;  %v1101_v38 = vsel %vm2271_vm15, %v2156_v47, %v1097_v63  ;;  %vm1129_vm5 = vweird.f32 %v1728_v50  ;;  %vm1115_vm4 = vmor %vm1113_vm12, %vm1114_vm3  ;;  %vm1118_vm8 = vcmp.eq.f32.partialorder %v1117_v19, 8.507059e+37  ;;  %v1666_v19 = vld [vmem:[%s2585_s6 + $0x8] sm:$0xff] }
 0x1d2   : > { %v1111_v40 = vmul.f32 %v1726_v31, %v1110_v61  ;;  %v1125_v43 = vsub.f32 1.0, %v1124_v45  ;;  %v1091_v45 = vsel %vm2198_vm10, %v1090_v44, %v1086_v4  ;;  %vm1128_vm15 = vweird.f32 %v2159_v48 }
 0x1d3   : > { %v1071_v55 = vsel %vm2287_vm1, %v2132_v21, %v1067_v46  ;;  %v1106_v33 = vsel %vm2212_vm14, %v1105_v27, %v1101_v38  ;;  %vm1130_vm10 = vmor %vm1128_vm15, %vm1129_vm5  ;;  %v1135_v44 = vor.u32 1.1754944e-38, %v1134_v41  ;;  %v1061_v63 = vsel %vm2208_vm13, %v2172_v59, %v1056_v36  ;;  %v716_v41 = vpop.permute.xlu1 %715 }
 0x1d4   : > { %v1112_v42 = vadd.f32 %v1726_v31, %v1111_v40  ;;  %v1126_v61 = vmul.f32 %v1728_v50, %v1125_v43  ;;  %v1041_v40 = vsel %vm2230_vm0, %v2123_v8, %v1037_v58  ;;  %v1142_v8 = vmul.f32 %v1091_v45, %v2011_v22 }
 0x1d5   : > { %vm1133_vm0 = vcmp.eq.f32.partialorder %v1132_v54, 8.507059e+37  ;;  %v2618_v21 = vsel %vm2182_vm6, %v2114_v56, %v2166_v57  ;;  %v1076_v59 = vsel %vm2234_vm7, %v2189_v25, %v1071_v55  ;;  %v1140_v7 = vmul.f32 %v1061_v63, %v2030_v29 }
 0x1d6   : > { %v1116_v47 = vsel %vm1115_vm4, %v1726_v31, %v1112_v42  ;;  %v1127_v43 = vadd.f32 %v1728_v50, %v1126_v61  ;;  %v1031_v52 = vsel %vm2222_vm2, %v2141_v35, %v2618_v21  ;;  %vm2620_vm6 = vnez %v2611_v39 }
 0x1d7   : > { %v1121_v53 = vsel %vm1118_vm8, %v1120_v10, %v1116_v47  ;;  %v1046_v56 = vsel %vm2620_vm6, %v1045_v49, %v1041_v40  ;;  %v1138_v35 = vmul.f32 %v1031_v52, %v2027_v28  ;;  %v1141_v51 = vmul.f32 %v1076_v59, %v2038_v32 }
 0x1d8   : > { %v1144_v31 = vmul.f32 %v1121_v53, %v2014_v23  ;;  %v1131_v58 = vsel %vm1130_vm10, %v1728_v50, %v1127_v43  ;;  %v1143_v50 = vmul.f32 %v1106_v33, %v2017_v24  ;;  %v1139_v25 = vmul.f32 %v1046_v56, %v2033_v30 }
 0x1d9   : > { %v1136_v48 = vsel %vm1133_vm0, %v1135_v44, %v1131_v58  ;;  %v1146_v0 = vpack.c.bf16 %v1140_v7, %v1138_v35  ;;  %vm2621_vm7 = vcmask 523264   ;;  %v791_v36 = vadd.f32 %v2097_v15, %v716_v41 }
 0x1da   : > { %v1148_v23 = vpack.c.bf16 %v1144_v31, %v1142_v8  ;;  %v1145_v34 = vmul.f32 %v1136_v48, %v2022_v26  ;;  %v1147_v6 = vpack.c.bf16 %v1141_v51, %v1139_v25  ;;  %v1665_v26 = vld [vmem:[%s2585_s6] sm:$0xff]  ;;  %vm2622_vm13 = vmmov %vm2621_vm7  ;;  %v820_v38 = vadd.f32 %v2099_v16, %v716_v41 }
 0x1db   : > { %vm2623_vm14 = vmmov %vm2621_vm7  ;;  %v1609_v42 = vmul.f32 -1.442695, %v791_v36 }
 0x1dc   : > { %1198 = vmatpush.bf16.msrb.mxu0 %v1148_v23  ;;  %v1149_v57 = vpack.c.bf16 %v1145_v34, %v1143_v50  ;;  %vm2624_vm2 = vmmov %vm2621_vm7  ;;  %v1610_v61 = vmul.f32 -1.442695, %v820_v38 }
 0x1de   : > { %1217 = vmatpush.bf16.msrb.mxu1 %v1149_v57 }
 0x1e0   : > { %1199 = vmatpush.bf16.msrb.mxu0 %v1146_v0 }
 0x1e2   : > { %1218 = vmatpush.bf16.msrb.mxu1 %v1147_v6 }
 0x1e4   : > { %1200 = vmatpush.bf16.msrb.mxu0 %v2045_v60  ;;  %v706_v60 = vpop.permute.xlu2 %705 }
 0x1e5   : > { %v815_v20 = vadd.f32 %v2091_v12, %v706_v60 }
 0x1e6   : > { %1219 = vmatpush.bf16.msrb.mxu1 %v2047_v62  ;;  %v786_v62 = vadd.f32 %v2089_v11, %v706_v60 }
 0x1e7   : > { %v1606_v27 = vmul.f32 -1.442695, %v815_v20 }
 0x1e8   : > { %1201 = vmatpush.bf16.msrb.mxu0 %v2051_v1  ;;  %v1605_v1 = vmul.f32 -1.442695, %v786_v62 }
 0x1ea   : > { %1220 = vmatpush.bf16.msrb.mxu1 %v2053_v2  ;;  %v711_v2 = vpop.permute.xlu0 %710  ;;  %1729 = vpow2.f32 %v1605_v1 }
 0x1eb   : > { %1629 = vmatmul.msk.bf16.vlgmr.msrb.gmra.mxu0 %vm2621_vm7, %v1665_v26  ;;  %v788_v46 = vadd.f32 %v2093_v13, %v711_v2  ;;  %1731 = vpow2.f32 %v1606_v27  ;;  %v817_v4 = vadd.f32 %v2095_v14, %v711_v2 }
 0x1ec   : > { %v721_v45 = vpop.permute.xlu2 %720 }
 0x1ed   : > { %1631 = vmatmul.msk.bf16.vlgmr.msrb.gmra.mxu1 %vm2622_vm13, %v1665_v26  ;;  %v1607_v5 = vmul.f32 -1.442695, %v788_v46  ;;  %v1608_v39 = vmul.f32 -1.442695, %v817_v4  ;;  %v793_v47 = vadd.f32 %v2101_v17, %v721_v45  ;;  %v822_v55 = vadd.f32 %v2103_v18, %v721_v45 }
 0x1ef   : > { %1733 = vpow2.f32 %v1607_v5  ;;  %v1611_v33 = vmul.f32 -1.442695, %v793_v47  ;;  %v1612_v31 = vmul.f32 -1.442695, %v822_v55 }
 0x1f0   : > { %v1730_v37 = vpop.eup %1729  ;;  %1735 = vpow2.f32 %v1608_v39 }
 0x1f1   : > { %v1732_v54 = vpop.eup %1731  ;;  %v2348_v11 = vadd.f32 1.0, %v1730_v37 }
 0x1f2   : > { %v2350_v12 = vadd.f32 1.0, %v1732_v54  ;;  %v1161_v54 = vpop.permute.xlu0 %1160 }
 0x1f3   : > { %1737 = vrcp.f32 %v2348_v11  ;;  %v877_v34 = vand.u32 2147483648, %v2348_v11  ;;  %vm871_vm12 = vweird.f32 %v2348_v11  ;;  %v875_v51 = vand.u32 2147483647, %v2348_v11 }
 0x1f4   : > { %1739 = vrcp.f32 %v2350_v12  ;;  %v890_v0 = vand.u32 2147483647, %v2350_v12  ;;  %v892_v25 = vand.u32 2147483648, %v2350_v12  ;;  %vm886_vm9 = vweird.f32 %v2350_v12 }
 0x1f5   : > { %v1734_v13 = vpop.eup %1733  ;;  %1741 = vpow2.f32 %v1609_v42  ;;  %v878_v60 = vor.u32 1.1754944e-38, %v877_v34  ;;  %vm876_vm1 = vcmp.eq.f32.partialorder %v875_v51, 8.507059e+37 }
 0x1f6   : > { %v1736_v14 = vpop.eup %1735  ;;  %v2355_v9 = vadd.f32 1.0, %v1734_v13  ;;  %1743 = vpow2.f32 %v1610_v61  ;;  %vm891_vm4 = vcmp.eq.f32.partialorder %v890_v0, 8.507059e+37  ;;  %v893_v5 = vor.u32 1.1754944e-38, %v892_v25 }
 0x1f7   : > { %v2357_v15 = vadd.f32 1.0, %v1736_v14 }
 0x1f8   : > { %1745 = vrcp.f32 %v2355_v9  ;;  %vm901_vm15 = vweird.f32 %v2355_v9  ;;  %v907_v37 = vand.u32 2147483648, %v2355_v9  ;;  %v905_v61 = vand.u32 2147483647, %v2355_v9 }
 0x1f9   : > { %v1738_v10 = vpop.eup %1737  ;;  %1747 = vrcp.f32 %v2357_v15  ;;  %vm916_vm6 = vweird.f32 %v2357_v15  ;;  %v920_v45 = vand.u32 2147483647, %v2357_v15 }
 0x1fa   : > { %v2359_v40 = vpop.eup %1739  ;;  %v867_v43 = vmul.f32 %v1738_v10, %v2348_v11  ;;  %1749 = vpow2.f32 %v1611_v33  ;;  %vm872_vm3 = vweird.f32 %v1738_v10 }
 0x1fb   : > { %1630 = vmatmul.msk.bf16.gmra.mxu0 %vm2623_vm14, %v1666_v19  ;;  %v1742_v16 = vpop.eup %1741  ;;  %v882_v53 = vmul.f32 %v2359_v40, %v2350_v12  ;;  %vm887_vm8 = vweird.f32 %v2359_v40  ;;  %vm2394_vm5 = vmor %vm871_vm12, %vm872_vm3  ;;  %vm906_vm14 = vcmp.eq.f32.partialorder %v905_v61, 8.507059e+37 }
 0x1fc   : > { %v2368_v44 = vadd.f32 1.0, %v1742_v16  ;;  %v1744_v63 = vpop.eup %1743  ;;  %v868_v8 = vsub.f32 1.0, %v867_v43  ;;  %vm2401_vm11 = vmor %vm886_vm9, %vm887_vm8 }
 0x1fd   : > { %1632 = vmatmul.msk.bf16.gmra.mxu1 %vm2624_vm2, %v1666_v19  ;;  %v883_v17 = vsub.f32 1.0, %v882_v53  ;;  %v2375_v21 = vadd.f32 1.0, %v1744_v63  ;;  %v908_v63 = vor.u32 1.1754944e-38, %v907_v37  ;;  %vm921_vm2 = vcmp.eq.f32.partialorder %v920_v45, 8.507059e+37 }
 0x1fe   : > { %v2370_v58 = vpop.eup %1745  ;;  %1751 = vrcp.f32 %v2368_v44  ;;  %v869_v52 = vmul.f32 %v1738_v10, %v868_v8  ;;  %vm931_vm3 = vweird.f32 %v2368_v44 }
 0x1ff   : > { %v2372_v48 = vpop.eup %1747  ;;  %v897_v18 = vmul.f32 %v2370_v58, %v2355_v9  ;;  %1753 = vpow2.f32 %v1612_v31  ;;  %v884_v49 = vmul.f32 %v2359_v40, %v883_v17  ;;  %vm902_vm10 = vweird.f32 %v2370_v58 }
 0x200   : > { %v912_v3 = vmul.f32 %v2372_v48, %v2357_v15  ;;  %1755 = vrcp.f32 %v2375_v21  ;;  %v1750_v59 = vpop.eup %1749  ;;  %v870_v50 = vadd.f32 %v1738_v10, %v869_v52  ;;  %vm917_vm0 = vweird.f32 %v2372_v48  ;;  %vm2434_vm7 = vmor %vm901_vm15, %vm902_vm10 }
 0x201   : > { %v898_v23 = vsub.f32 1.0, %v897_v18  ;;  %v885_v57 = vadd.f32 %v2359_v40, %v884_v49  ;;  %v2392_v6 = vadd.f32 1.0, %v1750_v59  ;;  %vm2443_vm13 = vmor %vm916_vm6, %vm917_vm0  ;;  %v1166_v49 = vpop.permute.xlu1 %1165  ;;  %vm946_vm9 = vweird.f32 %v2375_v21 }
 0x202   : > { %v913_v56 = vsub.f32 1.0, %v912_v3  ;;  %v874_v19 = vsel %vm2394_vm5, %v1738_v10, %v870_v50  ;;  %v922_v10 = vand.u32 2147483648, %v2357_v15 }
 0x203   : > { %v899_v20 = vmul.f32 %v2370_v58, %v898_v23  ;;  %v889_v46 = vsel %vm2401_vm11, %v2359_v40, %v885_v57  ;;  %1757 = vrcp.f32 %v2392_v6  ;;  %v879_v39 = vsel %vm876_vm1, %v878_v60, %v874_v19 }
 0x204   : > { %v2384_v7 = vpop.eup %1751  ;;  %v914_v4 = vmul.f32 %v2372_v48, %v913_v56  ;;  %v894_v11 = vsel %vm891_vm4, %v893_v5, %v889_v46  ;;  %v1240_v40 = vsub.f32 1.0, %v879_v39  ;;  %v923_v31 = vor.u32 1.1754944e-38, %v922_v10 }
 0x205   : > { %v1754_v35 = vpop.eup %1753  ;;  %v927_v27 = vmul.f32 %v2384_v7, %v2368_v44  ;;  %v900_v12 = vadd.f32 %v2370_v58, %v899_v20  ;;  %v1241_v16 = vsub.f32 1.0, %v894_v11  ;;  %vm932_vm8 = vweird.f32 %v2384_v7 }
 0x206   : > { %v2406_v1 = vpop.eup %1755  ;;  %v2410_v2 = vadd.f32 1.0, %v1754_v35  ;;  %v915_v13 = vadd.f32 %v2372_v48, %v914_v4  ;;  %v1248_v18 = vmul.f32 %v1240_v40, %v2027_v28  ;;  %v935_v28 = vand.u32 2147483647, %v2368_v44  ;;  %vm2472_vm5 = vmor %vm931_vm3, %vm932_vm8 }
 0x207   : > { %v942_v41 = vmul.f32 %v2406_v1, %v2375_v21  ;;  %v928_v42 = vsub.f32 1.0, %v927_v27  ;;  %v904_v53 = vsel %vm2434_vm7, %v2370_v58, %v900_v12  ;;  %v937_v58 = vand.u32 2147483648, %v2368_v44 }
 0x208   : > { %1759 = vrcp.f32 %v2410_v2  ;;  %v919_v9 = vsel %vm2443_vm13, %v2372_v48, %v915_v13  ;;  %v1249_v52 = vmul.f32 %v1241_v16, %v2033_v30  ;;  %v909_v3 = vsel %vm906_vm14, %v908_v63, %v904_v53 }
 0x209   : > { %v943_v55 = vsub.f32 1.0, %v942_v41  ;;  %v2447_v33 = vpop.eup %1757  ;;  %v929_v8 = vmul.f32 %v2384_v7, %v928_v42  ;;  %v924_v48 = vsel %vm921_vm2, %v923_v31, %v919_v9  ;;  %v1242_v51 = vsub.f32 1.0, %v909_v3 }
 0x20a   : > { %v957_v59 = vmul.f32 %v2447_v33, %v2392_v6  ;;  %v938_v25 = vor.u32 1.1754944e-38, %v937_v58  ;;  %v1243_v60 = vsub.f32 1.0, %v924_v48  ;;  %vm947_vm12 = vweird.f32 %v2406_v1 }
 0x20b   : > { %v944_v50 = vmul.f32 %v2406_v1, %v943_v55  ;;  %v930_v57 = vadd.f32 %v2384_v7, %v929_v8  ;;  %v950_v41 = vand.u32 2147483647, %v2375_v21  ;;  %vm936_vm11 = vcmp.eq.f32.partialorder %v935_v28, 8.507059e+37  ;;  %vm2491_vm1 = vmor %vm946_vm9, %vm947_vm12 }
 0x20c   : > { %v958_v62 = vsub.f32 1.0, %v957_v59  ;;  %v1251_v61 = vmul.f32 %v1243_v60, %v2038_v32  ;;  %vm962_vm15 = vweird.f32 %v2447_v33  ;;  %vm961_vm10 = vweird.f32 %v2392_v6  ;;  %v1176_v59 = vpop.permute.xlu0 %1175 }
 0x20d   : > { %v945_v4 = vadd.f32 %v2406_v1, %v944_v50  ;;  %v934_v5 = vsel %vm2472_vm5, %v2384_v7, %v930_v57  ;;  %vm951_vm4 = vcmp.eq.f32.partialorder %v950_v41, 8.507059e+37  ;;  %v965_v9 = vand.u32 2147483647, %v2392_v6  ;;  %vm2514_vm6 = vmor %vm961_vm10, %vm962_vm15 }
 0x20e   : > { %v2454_v17 = vpop.eup %1759  ;;  %v939_v12 = vsel %vm936_vm11, %v938_v25, %v934_v5  ;;  %v959_v13 = vmul.f32 %v2447_v33, %v958_v62  ;;  %v967_v8 = vand.u32 2147483648, %v2392_v6  ;;  %vm976_vm7 = vweird.f32 %v2410_v2 }
 0x20f   : > { %v972_v30 = vmul.f32 %v2454_v17, %v2410_v2  ;;  %v1244_v53 = vsub.f32 1.0, %v939_v12  ;;  %vm977_vm0 = vweird.f32 %v2454_v17  ;;  %v980_v50 = vand.u32 2147483647, %v2410_v2 }
 0x210   : > { %v960_v63 = vadd.f32 %v2447_v33, %v959_v13  ;;  %v968_v57 = vor.u32 1.1754944e-38, %v967_v8  ;;  %vm2528_vm13 = vmor %vm976_vm7, %vm977_vm0  ;;  %vm966_vm14 = vcmp.eq.f32.partialorder %v965_v9, 8.507059e+37 }
 0x211   : > { %v973_v37 = vsub.f32 1.0, %v972_v30  ;;  %vm981_vm2 = vcmp.eq.f32.partialorder %v980_v50, 8.507059e+37 }
 0x212   : > { %v964_v6 = vsel %vm2514_vm6, %v2447_v33, %v960_v63 }
 0x213   : > { %v974_v43 = vmul.f32 %v2454_v17, %v973_v37 }
 0x268   : > { %v1203_v36 = vpop.f32.mrf.mxu0 }
 0x269   : > { %v1204_v38 = vadd.f32 %v1203_v36, %v1161_v54  ;;  %v1171_v36 = vpop.permute.xlu2 %1170 }
 0x26a   : > { %v1222_v14 = vpop.f32.mrf.mxu1 }
 0x26b   : > { %1761 = vtanh.f32 %v1204_v38  ;;  %v1223_v47 = vadd.f32 %v1222_v14, %v1161_v54  ;;  %v949_v38 = vsel %vm2491_vm1, %v2406_v1, %v945_v4 }
 0x26d   : > { %1763 = vtanh.f32 %v1223_v47 }
 0x270   : > { %v1205_v23 = vpop.f32.mrf.mxu0 }
 0x271   : > { %v1762_v34 = vpop.eup %1761  ;;  %v1206_v56 = vadd.f32 %v1205_v23, %v1166_v49 }
 0x272   : > { %v1256_v35 = vmul.f32 %v1762_v34, %v879_v39  ;;  %v1224_v0 = vpop.f32.mrf.mxu1  ;;  %v952_v39 = vand.u32 2147483648, %v2375_v21  ;;  %v1250_v21 = vmul.f32 %v1242_v51, %v2030_v29 }
 0x273   : > { %v1764_v26 = vpop.eup %1763  ;;  %1765 = vtanh.f32 %v1206_v56  ;;  %v1225_v19 = vadd.f32 %v1224_v0, %v1166_v49  ;;  %v982_v49 = vand.u32 2147483648, %v2410_v2  ;;  %v1252_v56 = vmul.f32 %v1244_v53, %v2011_v22 }
 0x274   : > { %v1264_v20 = vadd.f32 %v1256_v35, %v1248_v18  ;;  %v1257_v27 = vmul.f32 %v1764_v26, %v894_v11  ;;  %v953_v10 = vor.u32 1.1754944e-38, %v952_v39  ;;  %v975_v18 = vadd.f32 %v2454_v17, %v974_v43 }
 0x275   : > { %1767 = vtanh.f32 %v1225_v19  ;;  %v969_v22 = vsel %vm966_vm14, %v968_v57, %v964_v6  ;;  %v983_v25 = vor.u32 1.1754944e-38, %v982_v49 }
 0x276   : > { %1272 = vst [vmem:[%s2484_s27] sm:$0xff] %v1264_v20  ;;  %v1280_v44 = vmax.f32 %v1264_v20, 0.0  ;;  %v1265_v54 = vadd.f32 %v1257_v27, %v1249_v52  ;;  %v954_v1 = vsel %vm951_vm4, %v953_v10, %v949_v38  ;;  %v979_v2 = vsel %vm2528_vm13, %v2454_v17, %v975_v18 }
 0x277   : > { %v1245_v52 = vsub.f32 1.0, %v954_v1  ;;  %v984_v20 = vsel %vm981_vm2, %v983_v25, %v979_v2  ;;  %v1246_v46 = vsub.f32 1.0, %v969_v22 }
 0x278   : > { %1273 = vst [vmem:[%s2484_s27 + $0x8] sm:$0xff] %v1265_v54  ;;  %v1281_v11 = vmax.f32 %v1265_v54, 0.0  ;;  %v1208_v42 = vpop.f32.mrf.mxu0  ;;  %v1247_v5 = vsub.f32 1.0, %v984_v20 }
 0x279   : > { %v1766_v14 = vpop.eup %1765  ;;  %v1209_v45 = vadd.f32 %v1208_v42, %v1171_v36  ;;  %v1253_v60 = vmul.f32 %v1245_v52, %v2017_v24 }
 0x27a   : > { %v1288_v40 = vpack.c.bf16 %v1281_v11, %v1280_v44  ;;  %v1258_v47 = vmul.f32 %v1766_v14, %v909_v3  ;;  %v1227_v16 = vpop.f32.mrf.mxu1  ;;  %v1777_v44 = vld [vmem:[%s2008_s19 + $0x30] sm:$0xff] }
 0x27b   : > { %v1768_v55 = vpop.eup %1767  ;;  %1769 = vtanh.f32 %v1209_v45  ;;  %v1228_v15 = vadd.f32 %v1227_v16, %v1171_v36  ;;  %v1254_v24 = vmul.f32 %v1777_v44, %v1246_v46  ;;  %v1778_v36 = vld [vmem:[%s2008_s19 + $0x38] sm:$0xff] }
 0x27c   : > { %1292 = vst [vmem:[%s2503_s17] sm:$0xff] %v1288_v40  ;;  %v1266_v29 = vadd.f32 %v1258_v47, %v1250_v21  ;;  %v1259_v32 = vmul.f32 %v1768_v55, %v924_v48  ;;  %v1255_v11 = vmul.f32 %v1778_v36, %v1247_v5 }
 0x27d   : > { %1771 = vtanh.f32 %v1228_v15  ;;  %v1322_v21 = vld [vmem:[%s2484_s27] sm:$0xff] (%p1889_p5) }
 0x27e   : > { %1274 = vst [vmem:[%s2484_s27 + $0x10] sm:$0xff] %v1266_v29  ;;  %v1282_v31 = vmax.f32 %v1266_v29, 0.0  ;;  %v1267_v58 = vadd.f32 %v1259_v32, %v1251_v61 }
 0x27f   : > { %v1324_v61 = vld [vmem:[%s2484_s27 + $0x8] sm:$0xff] (%p1889_p5)  ;;  %1323 = vst [vmem:[%s1309_s14] sm:$0xff] (%p1889_p5), %v1322_v21 }
 0x280   : > { %1275 = vst [vmem:[%s2484_s27 + $0x18] sm:$0xff] %v1267_v58  ;;  %v1283_v23 = vmax.f32 %v1267_v58, 0.0  ;;  %v1210_v48 = vpop.f32.mrf.mxu0 }
 0x281   : > { %v1770_v34 = vpop.eup %1769  ;;  %v1211_v28 = vadd.f32 %v1210_v48, %v1176_v59  ;;  %1325 = vst [vmem:[%s1309_s14 + $0x8] sm:$0xff] (%p1889_p5), %v1324_v61 }
 0x282   : > { %v1289_v35 = vpack.c.bf16 %v1283_v23, %v1282_v31  ;;  %v1260_v51 = vmul.f32 %v1770_v34, %v939_v12  ;;  %v1229_v33 = vpop.f32.mrf.mxu1 }
 0x283   : > { %v1772_v0 = vpop.eup %1771  ;;  %1773 = vtanh.f32 %v1211_v28  ;;  %v1230_v26 = vadd.f32 %v1229_v33, %v1176_v59 }
 0x284   : > { %1293 = vst [vmem:[%s2503_s17 + $0x8] sm:$0xff] %v1289_v35  ;;  %v1268_v19 = vadd.f32 %v1260_v51, %v1252_v56  ;;  %v1261_v62 = vmul.f32 %v1772_v0, %v954_v1 }
 0x285   : > { %1775 = vtanh.f32 %v1230_v26  ;;  %v1326_v45 = vld [vmem:[%s2484_s27 + $0x10] sm:$0xff] (%p1889_p5) }
 0x286   : > { %1276 = vst [vmem:[%s2484_s27 + $0x20] sm:$0xff] %v1268_v19  ;;  %v1284_v17 = vmax.f32 %v1268_v19, 0.0  ;;  %v1269_v27 = vadd.f32 %v1261_v62, %v1253_v60 }
 0x287   : > { %v1328_v10 = vld [vmem:[%s2484_s27 + $0x18] sm:$0xff] (%p1889_p5)  ;;  %1327 = vst [vmem:[%s1309_s14 + $0x20] sm:$0xff] (%p1889_p5), %v1326_v45 }
 0x288   : > { %1277 = vst [vmem:[%s2484_s27 + $0x28] sm:$0xff] %v1269_v27  ;;  %v1285_v4 = vmax.f32 %v1269_v27, 0.0 }
 0x289   : > { %v1774_v39 = vpop.eup %1773  ;;  %1329 = vst [vmem:[%s1309_s14 + $0x28] sm:$0xff] (%p1889_p5), %v1328_v10 }
 0x28a   : > { %v1290_v37 = vpack.c.bf16 %v1285_v4, %v1284_v17  ;;  %v1262_v54 = vmul.f32 %v1774_v39, %v969_v22 }
 0x28b   : > { %v1776_v41 = vpop.eup %1775 }
 0x28c   : > { %1294 = vst [vmem:[%s2503_s17 + $0x10] sm:$0xff] %v1290_v37  ;;  %v1270_v7 = vadd.f32 %v1262_v54, %v1254_v24  ;;  %v1263_v12 = vmul.f32 %v1776_v41, %v984_v20 }
 0x28d   : > { %v1330_v40 = vld [vmem:[%s2484_s27 + $0x20] sm:$0xff] (%p1889_p5) }
 0x28e   : > { %1278 = vst [vmem:[%s2484_s27 + $0x30] sm:$0xff] %v1270_v7  ;;  %v1286_v42 = vmax.f32 %v1270_v7, 0.0  ;;  %v1271_v38 = vadd.f32 %v1263_v12, %v1255_v11 }
 0x28f   : > { %v1332_v47 = vld [vmem:[%s2484_s27 + $0x28] sm:$0xff] (%p1889_p5)  ;;  %1331 = vst [vmem:[%s1309_s14 + $0x40] sm:$0xff] (%p1889_p5), %v1330_v40 }
 0x290   : > { %1279 = vst [vmem:[%s2484_s27 + $0x38] sm:$0xff] %v1271_v38  ;;  %v1287_v13 = vmax.f32 %v1271_v38, 0.0  ;;  %1306 = sbr.rel (!%p1889_p5) target bundleno = 665 (0x299), region = 117 }
 0x291   : > { %1333 = vst [vmem:[%s1309_s14 + $0x48] sm:$0xff] (%p1889_p5), %v1332_v47 }
 0x292   : > { %v1291_v14 = vpack.c.bf16 %v1287_v13, %v1286_v42 }
 0x294   : > { %1295 = vst [vmem:[%s2503_s17 + $0x18] sm:$0xff] %v1291_v14 }
 0x295   : > { %v1334_v16 = vld [vmem:[%s2484_s27 + $0x30] sm:$0xff] }
 0x296   : > { %1335 = vst [vmem:[%s1309_s14 + $0x60] sm:$0xff] %v1334_v16 }
 0x297   : > { %v1336_v43 = vld [vmem:[%s2484_s27 + $0x38] sm:$0xff] }
 0x298   : > { %1337 = vst [vmem:[%s1309_s14 + $0x68] sm:$0xff] %v1336_v43 }
 0x299 PF: > { %1343 = sbr.rel (!%p1889_p5) target bundleno = 673 (0x2a1), region = 140  ;;  %s1668_s20 = sshll.u32 (%p1889_p5), %s1870_s12, 3  ;;  %v1381_v55 = vld [vmem:[%s2503_s17] sm:$0xff] (%p1889_p5)  ;;  %v1383_v53 = vld [vmem:[%s2503_s17 + $0x8] sm:$0xff] (%p1889_p5)  ;;  %v1385_v1 = vld [vmem:[%s2503_s17 + $0x10] sm:$0xff] (%p1889_p5) }
 0x29a   : > { %s1346_s30 = scalar_lea.vmem (%p1889_p5), %s2588_s9, %s1668_s20 }
 0x29b   : > { %1382 = vst [vmem:[%s1346_s30] sm:$0xff] (%p1889_p5), %v1381_v55 }
 0x29c   : > { %1384 = vst [vmem:[%s1346_s30 + $0x10] sm:$0xff] (%p1889_p5), %v1383_v53 }
 0x29d   : > { %1386 = vst [vmem:[%s1346_s30 + $0x20] sm:$0xff] (%p1889_p5), %v1385_v1 }
 0x29f   : > { %v1387_v15 = vld [vmem:[%s2503_s17 + $0x18] sm:$0xff] }
 0x2a0   : > { %1388 = vst [vmem:[%s1346_s30 + $0x30] sm:$0xff] %v1387_v15 }
 0x2a1 PF: > { %p17_p10 = scmp.ge.s32.totalorder %s1873_s13, 4   ;;  %s2641_s30 = smov %s1797_s10 }
 0x2a2   : > { %s2642_s10 = smov %s1883_s16  ;;  %s2643_s11 = smov %s1873_s13 }
 0x2a3   :  { %19 = sbr.rel (!%p17_p10) target bundleno = 2 (0x2), region = 229 }

// kernel: rim_forward.17
= control target key start
LH: loop header
LB: loop body
LE: loop exit
PB: predicated region body
PF: predicated region fallthrough
CT: control target
= control target key end

     0   :  { %s1074_s15 = smov 0   ;;  %s1076_s16 = smov 0   ;;  %s1304_s0 = inlined_call_operand.vmem [shape: bf16[288,512], index: 0, kind: input, shape index: {}]   ;;  %s1305_s1 = inlined_call_operand.vmem [shape: bf16[2,288], index: 1, kind: input, shape index: {}]   ;;  %s1306_s2 = inlined_call_operand.vmem [shape: f32[2,1], index: 2, kind: input, shape index: {}]   ;;  %s1307_s3 = inlined_call_operand.vmem [shape: f32[2,512], index: 3, kind: input, shape index: {}]   ;;  %s1308_s4 = inlined_call_operand.vmem [shape: f32[2,512], index: 4, kind: output, shape index: {}]  }
   0x1   :  { %s1078_s17 = smov 0  }
   0x2 LB: > { %s800_s18 = sadd.s32 4294967295, %s1046_s17   ;;  %s1091_s19 = sadd.s32 1, %s1046_s17   ;;  %s1046_s17 = sphi %s1078_s17, %s1311_s17   ;;  %s1042_s16 = sphi %s1076_s16, %s1310_s16   ;;  %s1038_s15 = sphi %s1074_s15, %s1309_s15  }
   0x3   : > { %s18_s20 = ssub.s32 %s1046_s17, %s1091_s19  ;;  %s21_s21 = sadd.s32 1, %s1042_s16 }
   0x4   : > { %p19_p0 = scmp.eq.s32.totalorder %s18_s20, 0  ;;  %p28_p1 = scmp.ne.s32.totalorder %s1042_s16, %s1038_s15 }
   0x5   : > { %p29_p2 = scmp.eq.s32.totalorder %s1046_s17, 0  ;;  %p803_p4 = scmp.ge.s32.totalorder %s1046_s17, 2 }
   0x6   : > { %s1100_s22 = scalar_select %p19_p0, %s1042_s16, %s21_s21  }
   0x7   : > { %p30_p3 = por %p29_p2, %p28_p1  ;;  %154 = sbr.rel (%p803_p4) target bundleno = 52 (0x34), region = 24 }
   0xc   : > { %157 = sbr.rel (!%p30_p3) target bundleno = 52 (0x34), region = 28  ;;  %s159_s23 = sand.u32 (%p30_p3), 1, %s1042_s16  }
   0xd   : > { %s959_s24 = sshll.u32 (%p30_p3), %s1046_s17, 3  ;;  %s996_s25 = smul.u32 (%p30_p3), 288, %s159_s23 }
   0xe   : > { %s1108_s28 = scalar_lea.vmem (%p30_p3), %s1304_s0, %s959_s24 }
   0xf   : > { %v263_v0 = vld [vmem:[%s1108_s28] sm:$0xff] (%p30_p3)  ;;  %v265_v1 = vld [vmem:[%s1108_s28 + $0x10] sm:$0xff] (%p30_p3)  ;;  %s1113_s29 = scalar_lea.vmem (%p30_p3), [#allocation2], %s996_s25 }
  0x10   : > { %v267_v2 = vld [vmem:[%s1108_s28 + $0x20] sm:$0xff] (%p30_p3)  ;;  %264 = vst [vmem:[%s1113_s29] sm:$0xff] (%p30_p3), %v263_v0  ;;  %v269_v3 = vld [vmem:[%s1108_s28 + $0x30] sm:$0xff] (%p30_p3) }
  0x11   : > { %266 = vst [vmem:[%s1113_s29 + $0x8] sm:$0xff] %v265_v1  ;;  %v271_v4 = vld [vmem:[%s1108_s28 + $0x40] sm:$0xff]  ;;  %v273_v5 = vld [vmem:[%s1108_s28 + $0x50] sm:$0xff] }
  0x12   : > { %268 = vst [vmem:[%s1113_s29 + $0x10] sm:$0xff] %v267_v2  ;;  %v275_v6 = vld [vmem:[%s1108_s28 + $0x60] sm:$0xff]  ;;  %v277_v7 = vld [vmem:[%s1108_s28 + $0x70] sm:$0xff] }
  0x13   : > { %270 = vst [vmem:[%s1113_s29 + $0x18] sm:$0xff] %v269_v3  ;;  %v279_v8 = vld [vmem:[%s1108_s28 + $0x80] sm:$0xff]  ;;  %v281_v9 = vld [vmem:[%s1108_s28 + $0x90] sm:$0xff] }
  0x14   : > { %272 = vst [vmem:[%s1113_s29 + $0x20] sm:$0xff] %v271_v4  ;;  %v283_v10 = vld [vmem:[%s1108_s28 + $0xa0] sm:$0xff]  ;;  %v285_v11 = vld [vmem:[%s1108_s28 + $0xb0] sm:$0xff] }
  0x15   : > { %274 = vst [vmem:[%s1113_s29 + $0x28] sm:$0xff] %v273_v5  ;;  %v287_v12 = vld [vmem:[%s1108_s28 + $0xc0] sm:$0xff]  ;;  %v289_v13 = vld [vmem:[%s1108_s28 + $0xd0] sm:$0xff] }
  0x16   : > { %276 = vst [vmem:[%s1113_s29 + $0x30] sm:$0xff] %v275_v6  ;;  %v291_v14 = vld [vmem:[%s1108_s28 + $0xe0] sm:$0xff]  ;;  %v293_v15 = vld [vmem:[%s1108_s28 + $0xf0] sm:$0xff] }
  0x17   : > { %278 = vst [vmem:[%s1113_s29 + $0x38] sm:$0xff] %v277_v7  ;;  %v295_v16 = vld [vmem:[%s1108_s28 + $0x100] sm:$0xff]  ;;  %v297_v17 = vld [vmem:[%s1108_s28 + $0x110] sm:$0xff] }
  0x18   : > { %280 = vst [vmem:[%s1113_s29 + $0x40] sm:$0xff] %v279_v8  ;;  %v299_v18 = vld [vmem:[%s1108_s28 + $0x120] sm:$0xff]  ;;  %v301_v19 = vld [vmem:[%s1108_s28 + $0x130] sm:$0xff] }
  0x19   : > { %282 = vst [vmem:[%s1113_s29 + $0x48] sm:$0xff] %v281_v9  ;;  %v303_v20 = vld [vmem:[%s1108_s28 + $0x140] sm:$0xff]  ;;  %v305_v21 = vld [vmem:[%s1108_s28 + $0x150] sm:$0xff] }
  0x1a   : > { %284 = vst [vmem:[%s1113_s29 + $0x50] sm:$0xff] %v283_v10  ;;  %v307_v22 = vld [vmem:[%s1108_s28 + $0x160] sm:$0xff]  ;;  %v309_v23 = vld [vmem:[%s1108_s28 + $0x170] sm:$0xff] }
  0x1b   : > { %286 = vst [vmem:[%s1113_s29 + $0x58] sm:$0xff] %v285_v11  ;;  %v311_v24 = vld [vmem:[%s1108_s28 + $0x180] sm:$0xff]  ;;  %v313_v25 = vld [vmem:[%s1108_s28 + $0x190] sm:$0xff] }
  0x1c   : > { %288 = vst [vmem:[%s1113_s29 + $0x60] sm:$0xff] %v287_v12  ;;  %v315_v26 = vld [vmem:[%s1108_s28 + $0x1a0] sm:$0xff]  ;;  %v317_v27 = vld [vmem:[%s1108_s28 + $0x1b0] sm:$0xff] }
  0x1d   : > { %290 = vst [vmem:[%s1113_s29 + $0x68] sm:$0xff] %v289_v13  ;;  %v319_v28 = vld [vmem:[%s1108_s28 + $0x1c0] sm:$0xff]  ;;  %v321_v29 = vld [vmem:[%s1108_s28 + $0x1d0] sm:$0xff] }
  0x1e   : > { %292 = vst [vmem:[%s1113_s29 + $0x70] sm:$0xff] %v291_v14  ;;  %v323_v30 = vld [vmem:[%s1108_s28 + $0x1e0] sm:$0xff]  ;;  %v325_v31 = vld [vmem:[%s1108_s28 + $0x1f0] sm:$0xff] }
  0x1f   : > { %294 = vst [vmem:[%s1113_s29 + $0x78] sm:$0xff] %v293_v15  ;;  %v327_v32 = vld [vmem:[%s1108_s28 + $0x200] sm:$0xff]  ;;  %v329_v33 = vld [vmem:[%s1108_s28 + $0x210] sm:$0xff] }
  0x20   : > { %296 = vst [vmem:[%s1113_s29 + $0x80] sm:$0xff] %v295_v16  ;;  %v331_v34 = vld [vmem:[%s1108_s28 + $0x220] sm:$0xff]  ;;  %v333_v35 = vld [vmem:[%s1108_s28 + $0x230] sm:$0xff] }
  0x21   : > { %298 = vst [vmem:[%s1113_s29 + $0x88] sm:$0xff] %v297_v17 }
  0x22   : > { %300 = vst [vmem:[%s1113_s29 + $0x90] sm:$0xff] %v299_v18 }
  0x23   : > { %302 = vst [vmem:[%s1113_s29 + $0x98] sm:$0xff] %v301_v19 }
  0x24   : > { %304 = vst [vmem:[%s1113_s29 + $0xa0] sm:$0xff] %v303_v20 }
  0x25   : > { %306 = vst [vmem:[%s1113_s29 + $0xa8] sm:$0xff] %v305_v21 }
  0x26   : > { %308 = vst [vmem:[%s1113_s29 + $0xb0] sm:$0xff] %v307_v22 }
  0x27   : > { %310 = vst [vmem:[%s1113_s29 + $0xb8] sm:$0xff] %v309_v23 }
  0x28   : > { %312 = vst [vmem:[%s1113_s29 + $0xc0] sm:$0xff] %v311_v24 }
  0x29   : > { %314 = vst [vmem:[%s1113_s29 + $0xc8] sm:$0xff] %v313_v25 }
  0x2a   : > { %316 = vst [vmem:[%s1113_s29 + $0xd0] sm:$0xff] %v315_v26 }
  0x2b   : > { %318 = vst [vmem:[%s1113_s29 + $0xd8] sm:$0xff] %v317_v27 }
  0x2c   : > { %320 = vst [vmem:[%s1113_s29 + $0xe0] sm:$0xff] %v319_v28 }
  0x2d   : > { %322 = vst [vmem:[%s1113_s29 + $0xe8] sm:$0xff] %v321_v29 }
  0x2e   : > { %324 = vst [vmem:[%s1113_s29 + $0xf0] sm:$0xff] %v323_v30 }
  0x2f   : > { %326 = vst [vmem:[%s1113_s29 + $0xf8] sm:$0xff] %v325_v31 }
  0x30   : > { %328 = vst [vmem:[%s1113_s29 + $0x100] sm:$0xff] %v327_v32 }
  0x31   : > { %330 = vst [vmem:[%s1113_s29 + $0x108] sm:$0xff] %v329_v33 }
  0x32   : > { %332 = vst [vmem:[%s1113_s29 + $0x110] sm:$0xff] %v331_v34 }
  0x33   : > { %334 = vst [vmem:[%s1113_s29 + $0x118] sm:$0xff] %v333_v35 }
  0x34 PF: > { %p806_p5 = scmp.ge.s32.totalorder %s1046_s17, 1  ;;  %p348_p6 = scmp.lt.s32.totalorder %s1046_s17, 3 }
  0x36   : > { %p349_p7 = pnand %p806_p5, %p348_p6 }
  0x37   : > { %s355_s30 = sand.u32 (!%p349_p7), 1, %s1038_s15   ;;  %s1192_s8 = sshll.u32 (!%p349_p7), %s800_s18, 1 }
  0x38   : > { %352 = sbr.rel (%p349_p7) target bundleno = 247 (0xf7), region = 70  ;;  %p387_p8 = scmp.lt.s32.totalorder (!%p349_p7), %s1192_s8, 3 }
  0x39   : > { %s997_s7 = smul.u32 (!%p349_p7), 288, %s355_s30 }
  0x3b   : > { %s1194_s9 = scalar_lea.vmem (!%p349_p7), [#allocation2], %s997_s7 }
  0x3d   : > { %v399_v36 = vld [vmem:[%s1305_s1] sm:$0x7]  ;;  %v869_v37 = vld [vmem:[%s1194_s9 + $0x70] sm:$0xf]  ;;  %v974_v42 = vld [vmem:[%s1194_s9 + $0x74] sm:$0xf] }
  0x3e   : > { %443 = vst [vmem:[#allocation1] ss:$9 sm:$0xff] %v399_v36  ;;  %v975_v38 = vld [vmem:[%s1194_s9 + $0x74] sm:$0xf0]  ;;  %v949_v39 = vld [vmem:[%s1194_s9 + $0x110] sm:$0xf] }
  0x3f   : > { %v870_v40 = vor.u32 %v975_v38, %v869_v37  ;;  %v995_v41 = vld [vmem:[%s1194_s9 + $0x114] sm:$0xf0]  ;;  %v871_v43 = vld [vmem:[%s1194_s9 + $0x78] sm:$0xf0]  ;;  %vm629_vm0 = vcmask 261120   ;;  %s1313_s8 = smov (!%p387_p8, %s1192_s8), 3 }
  0x40   : > { %v950_v44 = vor.u32 %v995_v41, %v949_v39  ;;  %v874_v45 = vor.u32 %v974_v42, %v871_v43  ;;  %v933_v46 = vld [vmem:[%s1194_s9 + $0xf0] sm:$0xf]  ;;  %v991_v47 = vld [vmem:[%s1194_s9 + $0xf4] sm:$0xf0]  ;;  %v861_v48 = vld [vmem:[%s1194_s9 + $0x60] sm:$0xf] }
  0x41   : > { %632 = vmatpush.bf16.msra.mxu0 %v870_v40  ;;  %v934_v49 = vor.u32 %v991_v47, %v933_v46  ;;  %v973_v50 = vld [vmem:[%s1194_s9 + $0x64] sm:$0xf0]  ;;  %v941_v51 = vld [vmem:[%s1194_s9 + $0x100] sm:$0xf]  ;;  %v972_v55 = vld [vmem:[%s1194_s9 + $0x64] sm:$0xf] }
  0x42   : > { %v993_v52 = vld [vmem:[%s1194_s9 + $0x104] sm:$0xf0]  ;;  %664 = vmatpush.bf16.msra.mxu2 %v950_v44  ;;  %671 = vmatpush.bf16.msra.mxu3 %v874_v45  ;;  %v862_v53 = vor.u32 %v973_v50, %v861_v48  ;;  %v863_v56 = vld [vmem:[%s1194_s9 + $0x68] sm:$0xf0]  ;;  %v990_v57 = vld [vmem:[%s1194_s9 + $0xf4] sm:$0xf] }
  0x43   : > { %v942_v54 = vor.u32 %v993_v52, %v941_v51  ;;  %645 = vmatpush.bf16.msra.mxu1 %v934_v49  ;;  %v866_v58 = vor.u32 %v972_v55, %v863_v56  ;;  %v935_v59 = vld [vmem:[%s1194_s9 + $0xf8] sm:$0xf0]  ;;  %v925_v60 = vld [vmem:[%s1194_s9 + $0xe0] sm:$0xf]  ;;  %v989_v61 = vld [vmem:[%s1194_s9 + $0xe4] sm:$0xf0] }
  0x44   : > { %v938_v62 = vor.u32 %v990_v57, %v935_v59  ;;  %v926_v63 = vor.u32 %v989_v61, %v925_v60  ;;  %v853_v0 = vld [vmem:[%s1194_s9 + $0x50] sm:$0xf]  ;;  %v971_v1 = vld [vmem:[%s1194_s9 + $0x54] sm:$0xf0]  ;;  %v970_v2 = vld [vmem:[%s1194_s9 + $0x54] sm:$0xf] }
  0x45   : > { %633 = vmatpush.bf16.msra.mxu0 %v862_v53  ;;  %v854_v3 = vor.u32 %v971_v1, %v853_v0  ;;  %v855_v4 = vld [vmem:[%s1194_s9 + $0x58] sm:$0xf0]  ;;  %v988_v5 = vld [vmem:[%s1194_s9 + $0xe4] sm:$0xf]  ;;  %v927_v6 = vld [vmem:[%s1194_s9 + $0xe8] sm:$0xf0] }
  0x46   : > { %665 = vmatpush.bf16.msra.mxu2 %v942_v54  ;;  %672 = vmatpush.bf16.msra.mxu3 %v866_v58  ;;  %v858_v7 = vor.u32 %v970_v2, %v855_v4  ;;  %v917_v8 = vld [vmem:[%s1194_s9 + $0xd0] sm:$0xf]  ;;  %v987_v9 = vld [vmem:[%s1194_s9 + $0xd4] sm:$0xf0]  ;;  %v845_v10 = vld [vmem:[%s1194_s9 + $0x40] sm:$0xf]  ;;  %v930_v11 = vor.u32 %v988_v5, %v927_v6 }
  0x47   : > { %646 = vmatpush.bf16.msra.mxu1 %v926_v63  ;;  %v918_v12 = vor.u32 %v987_v9, %v917_v8  ;;  %v969_v13 = vld [vmem:[%s1194_s9 + $0x44] sm:$0xf0]  ;;  %v968_v14 = vld [vmem:[%s1194_s9 + $0x44] sm:$0xf]  ;;  %v847_v15 = vld [vmem:[%s1194_s9 + $0x48] sm:$0xf0] }
  0x48   : > { %v986_v16 = vld [vmem:[%s1194_s9 + $0xd4] sm:$0xf]  ;;  %v919_v17 = vld [vmem:[%s1194_s9 + $0xd8] sm:$0xf0]  ;;  %v909_v18 = vld [vmem:[%s1194_s9 + $0xc0] sm:$0xf]  ;;  %v846_v19 = vor.u32 %v969_v13, %v845_v10  ;;  %v850_v22 = vor.u32 %v968_v14, %v847_v15 }
  0x49   : > { %634 = vmatpush.bf16.msra.mxu0 %v854_v3  ;;  %v985_v20 = vld [vmem:[%s1194_s9 + $0xc4] sm:$0xf0]  ;;  %v837_v23 = vld [vmem:[%s1194_s9 + $0x30] sm:$0xf]  ;;  %v967_v24 = vld [vmem:[%s1194_s9 + $0x34] sm:$0xf0]  ;;  %v922_v25 = vor.u32 %v986_v16, %v919_v17 }
  0x4a   : > { %684 = vmatpush.bf16.msrb.mxu2 %v938_v62  ;;  %v1230_v21 = vld [vmem:[#allocation1 + $0x12] sm:$0xff]  ;;  %673 = vmatpush.bf16.msra.mxu3 %v858_v7  ;;  %v910_v26 = vor.u32 %v985_v20, %v909_v18  ;;  %v966_v27 = vld [vmem:[%s1194_s9 + $0x34] sm:$0xf]  ;;  %v839_v28 = vld [vmem:[%s1194_s9 + $0x38] sm:$0xf0]  ;;  %v838_v33 = vor.u32 %v967_v24, %v837_v23  ;;  %s808_s10 = sshll.u32 %s1313_s8, 1 }
  0x4b   : > { %955 = vmatmul.msk.bf16.vlgmr.msra.gmra.mxu2 %vm629_vm0, %v1230_v21  ;;  %647 = vmatpush.bf16.msra.mxu1 %v918_v12  ;;  %v984_v29 = vld [vmem:[%s1194_s9 + $0xc4] sm:$0xf]  ;;  %v911_v30 = vld [vmem:[%s1194_s9 + $0xc8] sm:$0xf0]  ;;  %v901_v31 = vld [vmem:[%s1194_s9 + $0xb0] sm:$0xf]  ;;  %v842_v34 = vor.u32 %v966_v27, %v839_v28  ;;  %s390_s13 = scalar_lea.vmem %s1307_s3, %s808_s10  ;;  %s396_s20 = scalar_lea.vmem %s1308_s4, %s808_s10 }
  0x4c   : > { %v983_v32 = vld [vmem:[%s1194_s9 + $0xb4] sm:$0xf0]  ;;  %v829_v35 = vld [vmem:[%s1194_s9 + $0x20] sm:$0xf]  ;;  %v965_v36 = vld [vmem:[%s1194_s9 + $0x24] sm:$0xf0]  ;;  %v914_v37 = vor.u32 %v984_v29, %v911_v30 }
  0x4d   : > { %635 = vmatpush.bf16.msra.mxu0 %v846_v19  ;;  %v902_v38 = vor.u32 %v983_v32, %v901_v31  ;;  %v964_v39 = vld [vmem:[%s1194_s9 + $0x24] sm:$0xf]  ;;  %v831_v40 = vld [vmem:[%s1194_s9 + $0x28] sm:$0xf0]  ;;  %v982_v41 = vld [vmem:[%s1194_s9 + $0xb4] sm:$0xf]  ;;  %v830_v45 = vor.u32 %v965_v36, %v829_v35 }
  0x4e   : > { %685 = vmatpush.bf16.msrb.mxu2 %v930_v11  ;;  %674 = vmatpush.bf16.msra.mxu3 %v850_v22  ;;  %v903_v42 = vld [vmem:[%s1194_s9 + $0xb8] sm:$0xf0]  ;;  %v893_v43 = vld [vmem:[%s1194_s9 + $0xa0] sm:$0xf]  ;;  %v981_v44 = vld [vmem:[%s1194_s9 + $0xa4] sm:$0xf0]  ;;  %v834_v48 = vor.u32 %v964_v39, %v831_v40 }
  0x4f   : > { %648 = vmatpush.bf16.msra.mxu1 %v910_v26  ;;  %v821_v46 = vld [vmem:[%s1194_s9 + $0x10] sm:$0xf]  ;;  %v963_v47 = vld [vmem:[%s1194_s9 + $0x14] sm:$0xf0]  ;;  %v962_v49 = vld [vmem:[%s1194_s9 + $0x14] sm:$0xf]  ;;  %v906_v52 = vor.u32 %v982_v41, %v903_v42  ;;  %v894_v53 = vor.u32 %v981_v44, %v893_v43 }
  0x50   : > { %v823_v50 = vld [vmem:[%s1194_s9 + $0x18] sm:$0xf0]  ;;  %v980_v51 = vld [vmem:[%s1194_s9 + $0xa4] sm:$0xf]  ;;  %v895_v54 = vld [vmem:[%s1194_s9 + $0xa8] sm:$0xf0]  ;;  %v822_v59 = vor.u32 %v963_v47, %v821_v46 }
  0x51   : > { %636 = vmatpush.bf16.msra.mxu0 %v838_v33  ;;  %v885_v55 = vld [vmem:[%s1194_s9 + $0x90] sm:$0xf]  ;;  %v979_v56 = vld [vmem:[%s1194_s9 + $0x94] sm:$0xf0]  ;;  %v813_v57 = vld [vmem:[%s1194_s9] sm:$0xf]  ;;  %v826_v63 = vor.u32 %v962_v49, %v823_v50  ;;  %v898_v5 = vor.u32 %v980_v51, %v895_v54 }
  0x52   : > { %686 = vmatpush.bf16.msrb.mxu2 %v922_v25  ;;  %675 = vmatpush.bf16.msra.mxu3 %v842_v34  ;;  %v961_v58 = vld [vmem:[%s1194_s9 + $0x4] sm:$0xf0]  ;;  %v960_v60 = vld [vmem:[%s1194_s9 + $0x4] sm:$0xf]  ;;  %v815_v61 = vld [vmem:[%s1194_s9 + $0x8] sm:$0xf0]  ;;  %v886_v6 = vor.u32 %v979_v56, %v885_v55 }
  0x53   : > { %649 = vmatpush.bf16.msra.mxu1 %v902_v38  ;;  %v444_v62 = vld [vmem:[#allocation1] sm:$0xff]  ;;  %v978_v0 = vld [vmem:[%s1194_s9 + $0x94] sm:$0xf]  ;;  %v445_v2 = vld [vmem:[#allocation1 + $0x9] sm:$0xff]  ;;  %v1048_v4 = vmov 0   ;;  %v814_v12 = vor.u32 %v961_v58, %v813_v57  ;;  %v818_v13 = vor.u32 %v960_v60, %v815_v61  ;;  %vm722_vm1 = vcmask 1041408  }
  0x54   : > { %v994_v1 = vld [vmem:[%s1194_s9 + $0x114] sm:$0xf]  ;;  %v710_v3 = vld [vmem:[%s390_s13] sm:$0xf]  ;;  %1023 = vset.pattern.permute.xlu0 %v1048_v4  ;;  %v951_v7 = vld [vmem:[%s1194_s9 + $0x118] sm:$0xf0] }
  0x55   : > { %637 = vmatpush.bf16.msra.mxu0 %v830_v45  ;;  %712 = vst [vmem:[#allocation1] ss:$4 sm:$0xff] %v710_v3  ;;  %v436_v8 = vld [vmem:[%s1306_s2] sm:$0x3]  ;;  %v887_v9 = vld [vmem:[%s1194_s9 + $0x98] sm:$0xf0]  ;;  %v954_v14 = vor.u32 %v994_v1, %v951_v7 }
  0x56   : > { %687 = vmatpush.bf16.msrb.mxu2 %v914_v37  ;;  %676 = vmatpush.bf16.msra.mxu3 %v834_v48  ;;  %v877_v10 = vld [vmem:[%s1194_s9 + $0x80] sm:$0xf]  ;;  %v977_v11 = vld [vmem:[%s1194_s9 + $0x84] sm:$0xf0]  ;;  %v890_v15 = vor.u32 %v978_v0, %v887_v9  ;;  %v992_v17 = vld [vmem:[%s1194_s9 + $0x104] sm:$0xf] }
  0x57   : > { %650 = vmatpush.bf16.msra.mxu1 %v894_v53  ;;  %439 = vperm.xlu0 %1023, %v436_v8   ;;  %v878_v16 = vor.u32 %v977_v11, %v877_v10  ;;  %v943_v18 = vld [vmem:[%s1194_s9 + $0x108] sm:$0xf0]  ;;  %v976_v19 = vld [vmem:[%s1194_s9 + $0x84] sm:$0xf] }
  0x58   : > { %v879_v20 = vld [vmem:[%s1194_s9 + $0x88] sm:$0xf0]  ;;  %v946_v22 = vor.u32 %v992_v17, %v943_v18 }
  0x59   : > { %638 = vmatpush.bf16.msra.mxu0 %v822_v59  ;;  %v882_v23 = vor.u32 %v976_v19, %v879_v20 }
  0x5a   : > { %688 = vmatpush.bf16.msrb.mxu2 %v906_v52  ;;  %677 = vmatpush.bf16.msra.mxu3 %v826_v63 }
  0x5b   : > { %651 = vmatpush.bf16.msra.mxu1 %v886_v6 }
  0x5c   : > { %v714_v39 = vld.sshfl [vmem:[#allocation1 + $0x8] sm:$0xff pattern:$0x73625140] }
  0x5d   : > { %639 = vmatpush.bf16.msra.mxu0 %v814_v12 }
  0x5e   : > { %689 = vmatpush.bf16.msrb.mxu2 %v898_v5  ;;  %678 = vmatpush.bf16.msra.mxu3 %v818_v13 }
  0x5f   : > { %652 = vmatpush.bf16.msra.mxu1 %v878_v16 }
  0x60   : > { %640 = vmatmul.bf16.vlgmr.msra.gmra.mxu0 %v444_v62 }
  0x61   : > { %703 = vmatpush.bf16.msrb.mxu0 %v954_v14  ;;  %679 = vmatmul.bf16.vlgmr.msra.gmra.mxu3 %v444_v62 }
  0x62   : > { %690 = vmatpush.bf16.msrb.mxu2 %v890_v15  ;;  %653 = vmatmul.bf16.vlgmr.msra.gmra.mxu1 %v445_v2 }
  0x65   : > { %704 = vmatpush.bf16.msrb.mxu0 %v946_v22 }
  0x66   : > { %691 = vmatpush.bf16.msrb.mxu2 %v882_v23 }
  0x69   : > { %692 = vmatmul.bf16.vlgmr.msrb.gmra.mxu2 %v445_v2 }
  0x70   : > { %956 = vmatmul.msk.bf16.vlgmr.msrb.gmra.mxu0 %vm629_vm0, %v1230_v21  ;;  %v713_v21 = vld.sshfl [vmem:[#allocation1] sm:$0xff pattern:$0x73625140] }
  0xc9   : > { %v440_v28 = vpop.permute.xlu0 %439 }
  0xce   : > { %v667_v24 = vpop.f32.mrf.mxu2 }
  0xd6   : > { %v669_v25 = vpop.f32.mrf.mxu2 }
  0xdd   : > { %v641_v26 = vpop.f32.mrf.mxu0 }
  0xde   : > { %v642_v31 = vadd.f32 %v641_v26, %v440_v28 }
  0xdf   : > { %v654_v27 = vpop.f32.mrf.mxu1 }
  0xe0   : > { %v655_v35 = vadd.f32 %v654_v27, %v642_v31 }
  0xe2   : > { %v668_v40 = vadd.f32 %v667_v24, %v655_v35 }
  0xe4   : > { %v680_v29 = vpop.f32.mrf.mxu3  ;;  %v717_v44 = vadd.f32 %v713_v21, %v668_v40 }
  0xe5   : > { %v643_v30 = vpop.f32.mrf.mxu0  ;;  %v681_v32 = vadd.f32 %v680_v29, %v440_v28 }
  0xe7   : > { %v656_v33 = vpop.f32.mrf.mxu1 }
  0xec   : > { %v693_v34 = vpop.f32.mrf.mxu2  ;;  %v682_v37 = vpop.f32.mrf.mxu3 }
  0xed   : > { %v694_v36 = vadd.f32 %v693_v34, %v681_v32  ;;  %v706_v38 = vpop.f32.mrf.mxu0 }
  0xef   : > { %v707_v41 = vadd.f32 %v706_v38, %v694_v36 }
  0xf1   : > { %v718_v42 = vadd.f32 %v714_v39, %v707_v41 }
  0xf3   : > { %v721_v45 = vrot.slane %v718_v42, 6 }
  0xf4   : > { %v695_v43 = vpop.f32.mrf.mxu2 }
  0xf5   : > { %v723_v46 = vsel %vm722_vm1, %v717_v44, %v721_v45  ;;  %v708_v47 = vpop.f32.mrf.mxu0 }
  0xf6   : > { %725 = vst [vmem:[%s396_s20] sm:$0xf] %v723_v46 }
  0xf7 PF: > { %p11_p9 = scmp.ge.s32.totalorder %s1091_s19, 4   ;;  %s1309_s15 = smov %s1042_s16 }
  0xf8   : > { %s1310_s16 = smov %s1100_s22  ;;  %s1311_s17 = smov %s1091_s19 }
  0xf9   :  { %13 = sbr.rel (!%p11_p9) target bundleno = 2 (0x2), region = 112 }

</bundles_post_ra>
